<compile_context>
chip_gen: v7x
topology: tpu7x:2x2x1
jax: 0.10.0
libtpu: 0.0.40
codegen_flags: <defaults>
</compile_context>

<pallas_src>
import functools

import jax
import jax.numpy as jnp
from jax.experimental import pallas as pl
from jax.experimental.pallas import tpu as pltpu


LANE = 128  # lane width of a TPU vreg


def _round_up(n, m):
    return ((n + m - 1) // m) * m


def _pad_to(a, shape):
    return jnp.pad(a, [(0, t - s) for s, t in zip(a.shape, shape)])


def _pack_factor(h_max):
    """Choose (pack factor P, per-block width Hp) so that P * Hp == LANE.

    P batch rows are packed side-by-side in one 128-lane vreg, each occupying
    Hp lanes (hidden dims are zero-padded up to Hp, which is exact).
    If the hidden width exceeds one vreg, fall back to no packing (P = 1).
    """
    if h_max >= LANE:
        return 1, _round_up(h_max, LANE)
    hp = 8
    while hp < h_max:
        hp *= 2
    return LANE // hp, hp


def _block_diag(w, p):
    """P-way block-diagonal replication of w: (r, c) -> (p*r, p*c)."""
    return jnp.kron(jnp.eye(p, dtype=w.dtype), w)


# ---------------------------------------------------------------------------
# Pallas kernel: whole MLP forward (2 hidden layers + output layer), fused.
# One grid step processes tb batch rows packed as a (tb/P, P*feat) slab;
# weights/biases use constant index_maps so they stay VMEM-resident.
# ---------------------------------------------------------------------------
def gaussian_net_kernel(x_ref, w0_ref, b0_ref, w1_ref, b1_ref, w2_ref, b2_ref,
                        o_ref):
    x = x_ref[...]                                  # (TBp, P*D_in)  -- tiny K
    w0 = w0_ref[...]                                # (P*D_in, 128) block-diag

    # --- layer 0: K = P*D_in is tiny -> VPU broadcast-FMA, skip the MXU -----
    acc = x[:, 0:1] * w0[0:1, :]                    # (TBp, 128)
    for d in range(1, x.shape[1]):                  # unrolled at trace time
        acc = acc + x[:, d:d + 1] * w0[d:d + 1, :]
    h = jnp.tanh(acc + b0_ref[...])                 # all 128 lanes real data

    # --- layer 1: lane-dense 128x128 MXU matmul (block-diag), f32 acc -------
    h = jnp.dot(h, w1_ref[...], preferred_element_type=jnp.float32)
    h = jnp.tanh(h + b1_ref[...])

    # --- output layer: canonical MXU pass, then compact (TBp, P*out) store --
    y = jnp.dot(h, w2_ref[...], preferred_element_type=jnp.float32)
    o_ref[...] = y[:, : o_ref.shape[1]] + b2_ref[...]


@functools.partial(jax.jit, static_argnames=("tb",))
def gaussian_net_forward(x, params, *, tb=512):
    """Fused GaussianNet forward; batch-tiled, lane-packed, weights resident.

    For very large spatial grids (B ~ 1e6) tb=1024-2048 also works fine:
    resident VMEM stays well under the scoped limit on every TPU generation.
    Pick tb so that ceil(B/tb) is even (>= 4) to balance v7x's 2 TensorCores.
    """
    (w0, b0), (w1, b1), (w2, b2) = params
    batch, in_dim = x.shape
    h0, h1, out_dim = w0.shape[1], w1.shape[1], w2.shape[1]

    # Pack P batch rows per vreg; each row's hidden features occupy Hp lanes.
    p, hp = _pack_factor(max(h0, h1))
    width = p * hp                              # packed hidden lane width (128)
    wout = p * out_dim                          # compact packed output width
    wout_pad = _round_up(wout, LANE)            # matmul-only lane padding

    # Block-diagonal packed weights / tiled biases (zero padding is exact).
    w0p = _block_diag(_pad_to(w0, (in_dim, hp)), p)            # (P*D_in, 128)
    b0p = jnp.tile(_pad_to(b0, (1, hp)), (1, p))               # (1, 128)
    w1p = _block_diag(_pad_to(w1, (hp, hp)), p)                # (128, 128)
    b1p = jnp.tile(_pad_to(b1, (1, hp)), (1, p))               # (1, 128)
    w2p = _pad_to(_block_diag(_pad_to(w2, (hp, out_dim)), p),
                  (width, wout_pad))                           # (128, 128)
    b2p = jnp.tile(b2, (1, p))                                 # (1, P*out)

    # Batch tile must hold whole packed rows and stay sublane-aligned.
    tb = max(_round_up(tb, 8 * p), 8 * p)
    bpad = _round_up(batch, tb)
    n_tiles = bpad // tb
    tbp = tb // p                                # packed rows per grid step

    # Pack the input: (bpad, D_in) -> (bpad/P, P*D_in); padded rows are junk
    # that the final slice discards.
    xp = _pad_to(x, (bpad, in_dim)).reshape(bpad // p, p * in_dim)

    const = lambda i: (0, 0)   # weights/biases: same block every step -> resident
    tiled = lambda i: (i, 0)   # x / out: march over the packed batch

    cost = pl.CostEstimate(
        flops=2 * (bpad // p) * (p * in_dim * width + width * width
                                 + width * wout_pad),
        transcendentals=2 * (bpad // p) * width,
        bytes_accessed=4 * (xp.size + w0p.size + b0p.size + w1p.size
                            + b1p.size + w2p.size + b2p.size
                            + (bpad // p) * wout),
    )

    out = pl.pallas_call(
        gaussian_net_kernel,
        out_shape=jax.ShapeDtypeStruct((bpad // p, wout), jnp.float32),
        grid=(n_tiles,),
        in_specs=[
            pl.BlockSpec((tbp, p * in_dim), tiled),
            pl.BlockSpec((p * in_dim, width), const),
            pl.BlockSpec((1, width), const),
            pl.BlockSpec((width, width), const),
            pl.BlockSpec((1, width), const),
            pl.BlockSpec((width, wout_pad), const),
            pl.BlockSpec((1, wout), const),
        ],
        out_specs=pl.BlockSpec((tbp, wout), tiled),
        compiler_params=pltpu.CompilerParams(
            dimension_semantics=("parallel",)),
        cost_estimate=cost,
    )(xp, w0p, b0p, w1p, b1p, w2p, b2p)

    # Unpack: (bpad/P, P*out_dim) -> (bpad, out_dim), then drop batch padding.
    return out.reshape(bpad, out_dim)[:batch]


# ---------------------------------------------------------------------------
# Deterministic "GaussianLayer" parameter construction (glue, plain JAX).
# prior_per='layer' -> one scalar rho per weight tensor / bias tensor.
# W = softplus(W_rho) * eps_W,  b = softplus(b_rho) * eps_b,  means = 0.
# ---------------------------------------------------------------------------
def make_gaussian_layer_params(key, in_dim, out_dim, w_rho, b_rho):
    k_w, k_b = jax.random.split(key)
    w_std = jax.nn.softplus(jnp.float32(w_rho))
    b_std = jax.nn.softplus(jnp.float32(b_rho))
    W = w_std * jax.random.normal(k_w, (in_dim, out_dim), dtype=jnp.float32)
    b = b_std * jax.random.normal(k_b, (1, out_dim), dtype=jnp.float32)
    return W, b


def make_net_params(key, input_dim, hidden_dims, output_dim):
    dims = [input_dim] + list(hidden_dims) + [output_dim]
    keys = jax.random.split(key, len(dims) - 1)
    params = []
    for i in range(len(dims) - 1):
        # deterministic per-layer rho values (stand-in for optimised hypers)
        params.append(
            make_gaussian_layer_params(keys[i], dims[i], dims[i + 1],
                                       w_rho=0.5413, b_rho=-1.0))
    return params


def gaussian_net_reference(x, params):
    """Pure-JAX reference of the same forward pass (for correctness check)."""
    (w0, b0), (w1, b1), (w2, b2) = params
    h = jnp.tanh(x @ w0 + b0)
    h = jnp.tanh(h @ w1 + b1)
    return h @ w2 + b2


if __name__ == "__main__":
    key = jax.random.PRNGKey(0)
    k_x, k_p = jax.random.split(key)

    batch = 2000           # pads to 2048 -> 4 even batch tiles of tb=512
    input_dim = 2          # spatial coordinates (X1, X2)
    hidden_dims = [32, 32]
    output_dim = 1

    x = jax.random.normal(k_x, (batch, input_dim), dtype=jnp.float32)
    params = make_net_params(k_p, input_dim, hidden_dims, output_dim)

    out = gaussian_net_forward(x, params, tb=512)
    out = jax.block_until_ready(out)

    ref = gaussian_net_reference(x, params)
    assert out.shape == (batch, output_dim)
    assert jnp.allclose(out, ref, atol=1e-4, rtol=1e-4)

    print("KERNEL_OK")
</pallas_src>

<mosaic_0001>
module attributes {stable_mosaic.version = 11 : i64} {
  func.func @gaussian_net_kernel(%arg0: i32, %arg1: memref<128x8xf32, #tpu.memory_space<vmem>>, %arg2: memref<8x128xf32, #tpu.memory_space<vmem>>, %arg3: memref<1x128xf32, #tpu.memory_space<vmem>>, %arg4: memref<128x128xf32, #tpu.memory_space<vmem>>, %arg5: memref<1x128xf32, #tpu.memory_space<vmem>>, %arg6: memref<128x128xf32, #tpu.memory_space<vmem>>, %arg7: memref<1x4xf32, #tpu.memory_space<vmem>>, %arg8: memref<128x4xf32, #tpu.memory_space<vmem>>) attributes {dimension_semantics = [#tpu.dimension_semantics<parallel>], iteration_bounds = array<i64: 4>, scalar_prefetch = 0 : i64, scratch_operands = 0 : i64, tpu.core_type = #tpu.core_type<tc>, window_params = [{transform_indices = @transform_0, window_bounds = array<i64: 128, 8>}, {pipeline_mode = #tpu.pipeline_mode<synchronous>, transform_indices = @transform_1, window_bounds = array<i64: 8, 128>}, {pipeline_mode = #tpu.pipeline_mode<synchronous>, transform_indices = @transform_2, window_bounds = array<i64: 1, 128>}, {pipeline_mode = #tpu.pipeline_mode<synchronous>, transform_indices = @transform_3, window_bounds = array<i64: 128, 128>}, {pipeline_mode = #tpu.pipeline_mode<synchronous>, transform_indices = @transform_4, window_bounds = array<i64: 1, 128>}, {pipeline_mode = #tpu.pipeline_mode<synchronous>, transform_indices = @transform_5, window_bounds = array<i64: 128, 128>}, {pipeline_mode = #tpu.pipeline_mode<synchronous>, transform_indices = @transform_6, window_bounds = array<i64: 1, 4>}, {transform_indices = @transform_7, window_bounds = array<i64: 128, 4>}]} {
    %c0 = arith.constant 0 : index
    %c0_0 = arith.constant 0 : index
    %0 = vector.load %arg1[%c0, %c0_0] : memref<128x8xf32, #tpu.memory_space<vmem>>, vector<128x8xf32>
    %c0_1 = arith.constant 0 : index
    %c0_2 = arith.constant 0 : index
    %1 = vector.load %arg2[%c0_1, %c0_2] : memref<8x128xf32, #tpu.memory_space<vmem>>, vector<8x128xf32>
    %2 = vector.extract_strided_slice %0 {offsets = [0, 0], sizes = [128, 1], strides = [1, 1]} : vector<128x8xf32> to vector<128x1xf32>
    %3 = vector.extract_strided_slice %1 {offsets = [0, 0], sizes = [1, 128], strides = [1, 1]} : vector<8x128xf32> to vector<1x128xf32>
    %4 = vector.broadcast %2 : vector<128x1xf32> to vector<128x128xf32>
    %5 = vector.broadcast %3 : vector<1x128xf32> to vector<128x128xf32>
    %6 = arith.mulf %4, %5 : vector<128x128xf32>
    %7 = vector.extract_strided_slice %0 {offsets = [0, 1], sizes = [128, 1], strides = [1, 1]} : vector<128x8xf32> to vector<128x1xf32>
    %8 = vector.extract_strided_slice %1 {offsets = [1, 0], sizes = [1, 128], strides = [1, 1]} : vector<8x128xf32> to vector<1x128xf32>
    %9 = vector.broadcast %7 : vector<128x1xf32> to vector<128x128xf32>
    %10 = vector.broadcast %8 : vector<1x128xf32> to vector<128x128xf32>
    %11 = arith.mulf %9, %10 : vector<128x128xf32>
    %12 = arith.addf %6, %11 : vector<128x128xf32>
    %13 = vector.extract_strided_slice %0 {offsets = [0, 2], sizes = [128, 1], strides = [1, 1]} : vector<128x8xf32> to vector<128x1xf32>
    %14 = vector.extract_strided_slice %1 {offsets = [2, 0], sizes = [1, 128], strides = [1, 1]} : vector<8x128xf32> to vector<1x128xf32>
    %15 = vector.broadcast %13 : vector<128x1xf32> to vector<128x128xf32>
    %16 = vector.broadcast %14 : vector<1x128xf32> to vector<128x128xf32>
    %17 = arith.mulf %15, %16 : vector<128x128xf32>
    %18 = arith.addf %12, %17 : vector<128x128xf32>
    %19 = vector.extract_strided_slice %0 {offsets = [0, 3], sizes = [128, 1], strides = [1, 1]} : vector<128x8xf32> to vector<128x1xf32>
    %20 = vector.extract_strided_slice %1 {offsets = [3, 0], sizes = [1, 128], strides = [1, 1]} : vector<8x128xf32> to vector<1x128xf32>
    %21 = vector.broadcast %19 : vector<128x1xf32> to vector<128x128xf32>
    %22 = vector.broadcast %20 : vector<1x128xf32> to vector<128x128xf32>
    %23 = arith.mulf %21, %22 : vector<128x128xf32>
    %24 = arith.addf %18, %23 : vector<128x128xf32>
    %25 = vector.extract_strided_slice %0 {offsets = [0, 4], sizes = [128, 1], strides = [1, 1]} : vector<128x8xf32> to vector<128x1xf32>
    %26 = vector.extract_strided_slice %1 {offsets = [4, 0], sizes = [1, 128], strides = [1, 1]} : vector<8x128xf32> to vector<1x128xf32>
    %27 = vector.broadcast %25 : vector<128x1xf32> to vector<128x128xf32>
    %28 = vector.broadcast %26 : vector<1x128xf32> to vector<128x128xf32>
    %29 = arith.mulf %27, %28 : vector<128x128xf32>
    %30 = arith.addf %24, %29 : vector<128x128xf32>
    %31 = vector.extract_strided_slice %0 {offsets = [0, 5], sizes = [128, 1], strides = [1, 1]} : vector<128x8xf32> to vector<128x1xf32>
    %32 = vector.extract_strided_slice %1 {offsets = [5, 0], sizes = [1, 128], strides = [1, 1]} : vector<8x128xf32> to vector<1x128xf32>
    %33 = vector.broadcast %31 : vector<128x1xf32> to vector<128x128xf32>
    %34 = vector.broadcast %32 : vector<1x128xf32> to vector<128x128xf32>
    %35 = arith.mulf %33, %34 : vector<128x128xf32>
    %36 = arith.addf %30, %35 : vector<128x128xf32>
    %37 = vector.extract_strided_slice %0 {offsets = [0, 6], sizes = [128, 1], strides = [1, 1]} : vector<128x8xf32> to vector<128x1xf32>
    %38 = vector.extract_strided_slice %1 {offsets = [6, 0], sizes = [1, 128], strides = [1, 1]} : vector<8x128xf32> to vector<1x128xf32>
    %39 = vector.broadcast %37 : vector<128x1xf32> to vector<128x128xf32>
    %40 = vector.broadcast %38 : vector<1x128xf32> to vector<128x128xf32>
    %41 = arith.mulf %39, %40 : vector<128x128xf32>
    %42 = arith.addf %36, %41 : vector<128x128xf32>
    %43 = vector.extract_strided_slice %0 {offsets = [0, 7], sizes = [128, 1], strides = [1, 1]} : vector<128x8xf32> to vector<128x1xf32>
    %44 = vector.extract_strided_slice %1 {offsets = [7, 0], sizes = [1, 128], strides = [1, 1]} : vector<8x128xf32> to vector<1x128xf32>
    %45 = vector.broadcast %43 : vector<128x1xf32> to vector<128x128xf32>
    %46 = vector.broadcast %44 : vector<1x128xf32> to vector<128x128xf32>
    %47 = arith.mulf %45, %46 : vector<128x128xf32>
    %48 = arith.addf %42, %47 : vector<128x128xf32>
    %c0_3 = arith.constant 0 : index
    %c0_4 = arith.constant 0 : index
    %49 = vector.load %arg3[%c0_3, %c0_4] : memref<1x128xf32, #tpu.memory_space<vmem>>, vector<1x128xf32>
    %50 = vector.broadcast %49 : vector<1x128xf32> to vector<128x128xf32>
    %51 = arith.addf %48, %50 : vector<128x128xf32>
    %52 = math.tanh %51 : vector<128x128xf32>
    %c0_5 = arith.constant 0 : index
    %c0_6 = arith.constant 0 : index
    %53 = vector.load %arg4[%c0_5, %c0_6] : memref<128x128xf32, #tpu.memory_space<vmem>>, vector<128x128xf32>
    %cst = arith.constant dense<0.000000e+00> : vector<128x128xf32>
    %54 = tpu.matmul %52, %53, %cst {dimension_numbers = #tpu.dot_dimension_numbers<[1], [0], [0], [1], [0, 0, 1, 1], [], []>} : vector<128x128xf32>, vector<128x128xf32>, vector<128x128xf32> -> vector<128x128xf32>
    %c0_7 = arith.constant 0 : index
    %c0_8 = arith.constant 0 : index
    %55 = vector.load %arg5[%c0_7, %c0_8] : memref<1x128xf32, #tpu.memory_space<vmem>>, vector<1x128xf32>
    %56 = vector.broadcast %55 : vector<1x128xf32> to vector<128x128xf32>
    %57 = arith.addf %54, %56 : vector<128x128xf32>
    %58 = math.tanh %57 : vector<128x128xf32>
    %c0_9 = arith.constant 0 : index
    %c0_10 = arith.constant 0 : index
    %59 = vector.load %arg6[%c0_9, %c0_10] : memref<128x128xf32, #tpu.memory_space<vmem>>, vector<128x128xf32>
    %cst_11 = arith.constant dense<0.000000e+00> : vector<128x128xf32>
    %60 = tpu.matmul %58, %59, %cst_11 {dimension_numbers = #tpu.dot_dimension_numbers<[1], [0], [0], [1], [0, 0, 1, 1], [], []>} : vector<128x128xf32>, vector<128x128xf32>, vector<128x128xf32> -> vector<128x128xf32>
    %61 = vector.extract_strided_slice %60 {offsets = [0, 0], sizes = [128, 4], strides = [1, 1]} : vector<128x128xf32> to vector<128x4xf32>
    %c0_12 = arith.constant 0 : index
    %c0_13 = arith.constant 0 : index
    %62 = vector.load %arg7[%c0_12, %c0_13] : memref<1x4xf32, #tpu.memory_space<vmem>>, vector<1x4xf32>
    %63 = vector.broadcast %62 : vector<1x4xf32> to vector<128x4xf32>
    %64 = arith.addf %61, %63 : vector<128x4xf32>
    %c0_14 = arith.constant 0 : index
    %c0_15 = arith.constant 0 : index
    %65 = vector.load %arg8[%c0_14, %c0_15] : memref<128x4xf32, #tpu.memory_space<vmem>>, vector<128x4xf32>
    tpu.vector_store %arg8[%c0_14, %c0_15], %64 {strides = array<i32>} : memref<128x4xf32, #tpu.memory_space<vmem>>, vector<128x4xf32>,
    return
  }
  func.func @transform_0(%arg0: i32) -> (i32, i32) {
    %c0_i32 = arith.constant 0 : i32
    %c0_i32_0 = arith.constant 0 : i32
    return %arg0, %c0_i32 : i32, i32
  }
  func.func @transform_1(%arg0: i32) -> (i32, i32) {
    %c0_i32 = arith.constant 0 : i32
    %c0_i32_0 = arith.constant 0 : i32
    %c0_i32_1 = arith.constant 0 : i32
    return %c0_i32, %c0_i32_0 : i32, i32
  }
  func.func @transform_2(%arg0: i32) -> (i32, i32) {
    %c0_i32 = arith.constant 0 : i32
    %c0_i32_0 = arith.constant 0 : i32
    %c0_i32_1 = arith.constant 0 : i32
    return %c0_i32, %c0_i32_0 : i32, i32
  }
  func.func @transform_3(%arg0: i32) -> (i32, i32) {
    %c0_i32 = arith.constant 0 : i32
    %c0_i32_0 = arith.constant 0 : i32
    %c0_i32_1 = arith.constant 0 : i32
    return %c0_i32, %c0_i32_0 : i32, i32
  }
  func.func @transform_4(%arg0: i32) -> (i32, i32) {
    %c0_i32 = arith.constant 0 : i32
    %c0_i32_0 = arith.constant 0 : i32
    %c0_i32_1 = arith.constant 0 : i32
    return %c0_i32, %c0_i32_0 : i32, i32
  }
  func.func @transform_5(%arg0: i32) -> (i32, i32) {
    %c0_i32 = arith.constant 0 : i32
    %c0_i32_0 = arith.constant 0 : i32
    %c0_i32_1 = arith.constant 0 : i32
    return %c0_i32, %c0_i32_0 : i32, i32
  }
  func.func @transform_6(%arg0: i32) -> (i32, i32) {
    %c0_i32 = arith.constant 0 : i32
    %c0_i32_0 = arith.constant 0 : i32
    %c0_i32_1 = arith.constant 0 : i32
    return %c0_i32, %c0_i32_0 : i32, i32
  }
  func.func @transform_7(%arg0: i32) -> (i32, i32) {
    %c0_i32 = arith.constant 0 : i32
    %c0_i32_0 = arith.constant 0 : i32
    return %arg0, %c0_i32 : i32, i32
  }
}

</mosaic_0001>

<bundles_post_ra>
// kernel: gaussian_net_forward.1
= control target key start
LH: loop header
LB: loop body
LE: loop exit
PB: predicated region body
PF: predicated region fallthrough
CT: control target
= control target key end

     0   :  { %s2059_s24 = smov 0   ;;  %s2920_s0 = inlined_call_operand.vmem [shape: f32[512,8], index: 0, kind: input, shape index: {}]   ;;  %s2921_s1 = inlined_call_operand.vmem [shape: f32[8,128], index: 1, kind: input, shape index: {}]   ;;  %s2922_s2 = inlined_call_operand.vmem [shape: f32[1,128], index: 2, kind: input, shape index: {}]   ;;  %s2923_s3 = inlined_call_operand.vmem [shape: f32[128,128], index: 3, kind: input, shape index: {}]   ;;  %s2924_s4 = inlined_call_operand.vmem [shape: f32[1,128], index: 4, kind: input, shape index: {}]   ;;  %s2925_s5 = inlined_call_operand.vmem [shape: f32[128,128], index: 5, kind: input, shape index: {}]   ;;  %s2926_s6 = inlined_call_operand.vmem [shape: f32[1,4], index: 6, kind: input, shape index: {}]   ;;  %s2927_s7 = inlined_call_operand.vmem [shape: f32[512,4], index: 7, kind: output, shape index: {}]  }
   0x1 LB: > { %s1579_s25 = sadd.s32 4294967295, %s2009_s24   ;;  %p1583_p0 = scmp.ge.s32.totalorder %s2009_s24, 1  ;;  %s2009_s24 = sphi %s2059_s24, %s17_s24  }
   0x2   : > { %p238_p1 = scmp.lt.s32.totalorder %s2009_s24, 5 }
   0x4   : > { %p239_p2 = pnand %p1583_p0, %p238_p1 }
   0x6   : > { %242 = sbr.rel (%p239_p2) target bundleno = 1010 (0x3f2), region = 48 }
   0xd   : > { %s1584_s26 = sshll.u32 %s1579_s25, 4  ;;  %v2928_v0 = vmov 4   ;;  %v2932_v1 = vmov 0   ;;  %v2938_v5 = vmov 1   ;;  %v2940_v7 = vmov 2   ;;  %v1138_v30 = vld [vmem:[%s2923_s3] sm:$0xff] }
   0xe   : > { %1857 = vset.pattern.permute.xlu0 %v2928_v0  ;;  %1849 = vset.pattern.permute.xlu1 %v2932_v1  ;;  %p271_p3 = scmp.lt.s32.totalorder %s1584_s26, 63  ;;  %v2936_v16 = vmov 3   ;;  %v2930_v19 = vmov 5   ;;  %v2942_v20 = vmov 6   ;;  %v2934_v22 = vmov 7   ;;  %v1139_v31 = vld [vmem:[%s2923_s3 + $0x8] sm:$0xff] }
   0xf   : > { %v1769_v33 = vpack.c.bf16 %v1139_v31, %v1138_v30  ;;  %v1140_v35 = vld [vmem:[%s2923_s3 + $0x10] sm:$0xff]  ;;  %v1141_v36 = vld [vmem:[%s2923_s3 + $0x18] sm:$0xff]  ;;  %v1142_v40 = vld [vmem:[%s2923_s3 + $0x20] sm:$0xff]  ;;  %v379_v47 = vlaneseq  ;;  %vm1506_vm0 = vcmask 31744  }
  0x10   : > { %s2987_s26 = smov (!%p271_p3, %s1584_s26), 63  ;;  %v1773_v37 = vpack.c.bf16 %v1141_v36, %v1140_v35  ;;  %v1143_v41 = vld [vmem:[%s2923_s3 + $0x28] sm:$0xff]  ;;  %v1144_v45 = vld [vmem:[%s2923_s3 + $0x30] sm:$0xff]  ;;  %v1145_v46 = vld [vmem:[%s2923_s3 + $0x38] sm:$0xff] }
  0x11   : > { %s1585_s27 = sshll.u32 %s2987_s26, 3  ;;  %1770 = vmatprep.subr.bf16.mxu0 %v1769_v33  ;;  %v1777_v42 = vpack.c.bf16 %v1143_v41, %v1142_v40  ;;  %v1781_v48 = vpack.c.bf16 %v1145_v46, %v1144_v45  ;;  %v1146_v51 = vld [vmem:[%s2923_s3 + $0x40] sm:$0xff]  ;;  %v1147_v52 = vld [vmem:[%s2923_s3 + $0x48] sm:$0xff]  ;;  %v2288_v53 = vshrl.u32 %v379_v47, 7  ;;  %v1148_v56 = vld [vmem:[%s2923_s3 + $0x50] sm:$0xff] }
  0x12   : > { %s2077_s30 = scalar_lea.vmem %s2920_s0, %s1585_s27  ;;  %1772 = vmatpush3.bf16.msra.mxu0 %v1769_v33  ;;  %v1785_v54 = vpack.c.bf16 %v1147_v52, %v1146_v51  ;;  %v1149_v57 = vld [vmem:[%s2923_s3 + $0x58] sm:$0xff]  ;;  %v2308_v61 = vld [vmem:[%s2921_s1] sm:$0xff]  ;;  %s2865_s25 = scalar_lea.vmem %s2927_s7, %s1585_s27 }
  0x13   : > { %v2080_v2 = vld [vmem:[%s2077_s30 + $0x8] sm:$0xff]  ;;  %v2083_v3 = vld [vmem:[%s2077_s30] sm:$0xff]  ;;  %v2088_v4 = vld [vmem:[%s2077_s30 + $0x10] sm:$0xff]  ;;  %1774 = vmatprep.subr.bf16.mxu0 %v1773_v37  ;;  %v381_v58 = vsub.s32 0, %v2288_v53  ;;  %v1789_v60 = vpack.c.bf16 %v1149_v57, %v1148_v56  ;;  %v465_v62 = vsub.s32 1, %v2288_v53  ;;  %v665_v57 = vsub.s32 3, %v2288_v53 }
  0x14   : > { %306 = vperm.xlu1 %1849, %v2080_v2   ;;  %700 = vperm.xlu0 %1857, %v2083_v3   ;;  %v2094_v6 = vld [vmem:[%s2077_s30 + $0x18] sm:$0xff]  ;;  %v2099_v8 = vld [vmem:[%s2077_s30 + $0x40] sm:$0xff]  ;;  %v2104_v9 = vld [vmem:[%s2077_s30 + $0x48] sm:$0xff] }
  0x15   : > { %v2114_v10 = vld [vmem:[%s2077_s30 + $0x20] sm:$0xff]  ;;  %v2120_v11 = vld [vmem:[%s2077_s30 + $0x30] sm:$0xff]  ;;  %v2126_v12 = vld [vmem:[%s2077_s30 + $0x58] sm:$0xff]  ;;  %v2327_v33 = vrot.slane %v2308_v61, %v465_v62 }
  0x16   : > { %v2131_v13 = vld [vmem:[%s2077_s30 + $0x60] sm:$0xff]  ;;  %v2140_v14 = vld [vmem:[%s2077_s30 + $0x38] sm:$0xff]  ;;  %v2148_v15 = vld [vmem:[%s2077_s30 + $0x68] sm:$0xff]  ;;  %1776 = vmatpush3.bf16.msra.mxu0 %v1773_v37 }
  0x17   : > { %v2154_v17 = vld [vmem:[%s2077_s30 + $0x70] sm:$0xff]  ;;  %v2157_v18 = vld [vmem:[%s2077_s30 + $0x28] sm:$0xff]  ;;  %v2191_v21 = vld [vmem:[%s2077_s30 + $0x78] sm:$0xff]  ;;  %1778 = vmatprep.subr.bf16.mxu0 %v1777_v42 }
  0x18   : > { %1850 = vset.pattern.permute.xlu1 %v2938_v5  ;;  %708 = vperm.xlu0 %1857, %v2088_v4   ;;  %v1152_v37 = vld [vmem:[%s2923_s3 + $0x70] sm:$0xff]  ;;  %v1153_v40 = vld [vmem:[%s2923_s3 + $0x78] sm:$0xff] }
  0x19   : > { %404 = vperm.xlu1 %1850, %v2080_v2   ;;  %v2347_v47 = vld [vmem:[%s2077_s30 + $0x50] sm:$0xff] }
  0x1a   : > { %1780 = vmatpush3.bf16.msra.mxu0 %v1777_v42  ;;  %v1797_v42 = vpack.c.bf16 %v1153_v40, %v1152_v37 }
  0x1b   : > { %1782 = vmatprep.subr.bf16.mxu0 %v1781_v48 }
  0x1c   : > { %712 = vperm.xlu0 %1857, %v2094_v6  }
  0x1d   : > { %1851 = vset.pattern.permute.xlu1 %v2940_v7 }
  0x1e   : > { %500 = vperm.xlu1 %1851, %v2083_v3   ;;  %1784 = vmatpush3.bf16.msra.mxu0 %v1781_v48 }
  0x1f   : > { %1786 = vmatprep.subr.bf16.mxu0 %v1785_v54 }
  0x20   : > { %732 = vperm.xlu0 %1857, %v2099_v8  }
  0x22   : > { %1852 = vset.pattern.permute.xlu1 %v2932_v1  ;;  %1788 = vmatpush3.bf16.msra.mxu0 %v1785_v54 }
  0x23   : > { %311 = vperm.xlu1 %1852, %v2088_v4   ;;  %1790 = vmatprep.subr.bf16.mxu0 %v1789_v60 }
  0x24   : > { %736 = vperm.xlu0 %1857, %v2104_v9  }
  0x26   : > { %1792 = vmatpush3.bf16.msra.mxu0 %v1789_v60 }
  0x27   : > { %1853 = vset.pattern.permute.xlu1 %v2938_v5 }
  0x28   : > { %1898 = vset.pattern.permute.xlu0 %v2932_v1  ;;  %408 = vperm.xlu1 %1853, %v2088_v4  }
  0x29   : > { %301 = vperm.xlu0 %1898, %v2083_v3  }
  0x2c   : > { %1854 = vset.pattern.permute.xlu1 %v2932_v1 }
  0x2d   : > { %321 = vperm.xlu0 %1898, %v2114_v10   ;;  %316 = vperm.xlu1 %1854, %v2094_v6  }
  0x31   : > { %331 = vperm.xlu0 %1898, %v2120_v11   ;;  %1855 = vset.pattern.permute.xlu1 %v2938_v5 }
  0x32   : > { %412 = vperm.xlu1 %1855, %v2094_v6  }
  0x35   : > { %356 = vperm.xlu0 %1898, %v2126_v12  }
  0x36   : > { %1856 = vset.pattern.permute.xlu1 %v2940_v7 }
  0x37   : > { %508 = vperm.xlu1 %1856, %v2088_v4  }
  0x39   : > { %361 = vperm.xlu0 %1898, %v2131_v13  }
  0x3b   : > { %512 = vperm.xlu1 %1856, %v2094_v6  }
  0x3d   : > { %1900 = vset.pattern.permute.xlu0 %v2938_v5 }
  0x3e   : > { %400 = vperm.xlu0 %1900, %v2083_v3  }
  0x3f   : > { %1858 = vset.pattern.permute.xlu1 %v2928_v0 }
  0x40   : > { %704 = vperm.xlu1 %1858, %v2080_v2  }
  0x42   : > { %428 = vperm.xlu0 %1900, %v2140_v14  }
  0x44   : > { %1859 = vset.pattern.permute.xlu1 %v2938_v5 }
  0x45   : > { %416 = vperm.xlu1 %1859, %v2114_v10  }
  0x46   : > { %432 = vperm.xlu0 %1900, %v2099_v8  }
  0x49   : > { %1860 = vset.pattern.permute.xlu1 %v2936_v16 }
  0x4a   : > { %452 = vperm.xlu0 %1900, %v2148_v15   ;;  %608 = vperm.xlu1 %1860, %v2088_v4  }
  0x4e   : > { %456 = vperm.xlu0 %1900, %v2154_v17   ;;  %1861 = vset.pattern.permute.xlu1 %v2932_v1 }
  0x4f   : > { %326 = vperm.xlu1 %1861, %v2157_v18  }
  0x52   : > { %1912 = vset.pattern.permute.xlu0 %v2936_v16 }
  0x53   : > { %600 = vperm.xlu0 %1912, %v2083_v3   ;;  %1862 = vset.pattern.permute.xlu1 %v2938_v5 }
  0x54   : > { %420 = vperm.xlu1 %1862, %v2157_v18  }
  0x57   : > { %604 = vperm.xlu0 %1912, %v2080_v2  }
  0x58   : > { %1863 = vset.pattern.permute.xlu1 %v2930_v19 }
  0x59   : > { %804 = vperm.xlu1 %1863, %v2080_v2  }
  0x5b   : > { %612 = vperm.xlu0 %1912, %v2094_v6  }
  0x5d   : > { %1864 = vset.pattern.permute.xlu1 %v2940_v7 }
  0x5e   : > { %516 = vperm.xlu1 %1864, %v2114_v10  }
  0x5f   : > { %628 = vperm.xlu0 %1912, %v2140_v14  }
  0x62   : > { %1865 = vset.pattern.permute.xlu1 %v2942_v20 }
  0x63   : > { %632 = vperm.xlu0 %1912, %v2099_v8   ;;  %900 = vperm.xlu1 %1865, %v2083_v3  }
  0x67   : > { %652 = vperm.xlu0 %1912, %v2148_v15   ;;  %1866 = vset.pattern.permute.xlu1 %v2940_v7 }
  0x68   : > { %520 = vperm.xlu1 %1866, %v2157_v18  }
  0x6b   : > { %1917 = vset.pattern.permute.xlu0 %v2940_v7 }
  0x6c   : > { %504 = vperm.xlu0 %1917, %v2080_v2   ;;  %1867 = vset.pattern.permute.xlu1 %v2942_v20 }
  0x6d   : > { %904 = vperm.xlu1 %1867, %v2080_v2  }
  0x70   : > { %532 = vperm.xlu0 %1917, %v2099_v8  }
  0x71   : > { %1868 = vset.pattern.permute.xlu1 %v2938_v5 }
  0x72   : > { %424 = vperm.xlu1 %1868, %v2120_v11  }
  0x74   : > { %536 = vperm.xlu0 %1917, %v2104_v9  }
  0x76   : > { %1869 = vset.pattern.permute.xlu1 %v2936_v16 }
  0x77   : > { %616 = vperm.xlu1 %1869, %v2114_v10  }
  0x78   : > { %556 = vperm.xlu0 %1917, %v2154_v17  }
  0x7b   : > { %1870 = vset.pattern.permute.xlu1 %v2934_v22 }
  0x7c   : > { %560 = vperm.xlu0 %1917, %v2191_v21   ;;  %1000 = vperm.xlu1 %1870, %v2083_v3  }
  0x80   : > { %1922 = vset.pattern.permute.xlu0 %v2942_v20  ;;  %1871 = vset.pattern.permute.xlu1 %v2932_v1 }
  0x81   : > { %908 = vperm.xlu0 %1922, %v2088_v4   ;;  %336 = vperm.xlu1 %1871, %v2140_v14  }
  0x85   : > { %912 = vperm.xlu0 %1922, %v2094_v6   ;;  %1872 = vset.pattern.permute.xlu1 %v2936_v16 }
  0x86   : > { %620 = vperm.xlu1 %1872, %v2157_v18  }
  0x89   : > { %920 = vperm.xlu0 %1922, %v2157_v18  }
  0x8a   : > { %1873 = vset.pattern.permute.xlu1 %v2930_v19 }
  0x8b   : > { %812 = vperm.xlu1 %1873, %v2094_v6  }
  0x8d   : > { %932 = vperm.xlu0 %1922, %v2099_v8  }
  0x8f   : > { %1874 = vset.pattern.permute.xlu1 %v2940_v7 }
  0x90   : > { %524 = vperm.xlu1 %1874, %v2120_v11  }
  0x91   : > { %936 = vperm.xlu0 %1922, %v2104_v9  }
  0x93   : > { %v2210_v23 = vpop.permute.xlu1 %306  ;;  %v2212_v24 = vpop.permute.xlu0 %700 }
  0x94   : > { %1875 = vset.pattern.permute.xlu1 %v2928_v0 }
  0x95   : > { %944 = vperm.xlu0 %1922, %v2126_v12   ;;  %716 = vperm.xlu1 %1875, %v2114_v10  }
  0x97   : > { %v2217_v25 = vpop.permute.xlu0 %708 }
  0x98   : > { %v2219_v26 = vpop.permute.xlu1 %404 }
  0x99   : > { %948 = vperm.xlu0 %1922, %v2131_v13   ;;  %1876 = vset.pattern.permute.xlu1 %v2940_v7 }
  0x9a   : > { %528 = vperm.xlu1 %1876, %v2140_v14  }
  0x9b   : > { %v2224_v27 = vpop.permute.xlu0 %712 }
  0x9d   : > { %1929 = vset.pattern.permute.xlu0 %v2930_v19  ;;  %v2227_v28 = vpop.permute.xlu1 %500 }
  0x9e   : > { %800 = vperm.xlu0 %1929, %v2083_v3   ;;  %1877 = vset.pattern.permute.xlu1 %v2928_v0  ;;  %v1151_v3 = vld [vmem:[%s2923_s3 + $0x68] sm:$0xff] }
  0x9f   : > { %720 = vperm.xlu1 %1877, %v2157_v18   ;;  %v2232_v29 = vpop.permute.xlu0 %732 }
  0xa2   : > { %808 = vperm.xlu0 %1929, %v2088_v4   ;;  %v2241_v32 = vpop.permute.xlu1 %311 }
  0xa3   : > { %1878 = vset.pattern.permute.xlu1 %v2932_v1  ;;  %v2244_v34 = vpop.permute.xlu0 %736 }
  0xa4   : > { %2944 = vst [vmem:[#allocation2_spill] sm:$0xff] %v2244_v34  ;;  %341 = vperm.xlu1 %1878, %v2099_v8   ;;  %v2962_v34 = vmov 7  }
  0xa6   : > { %828 = vperm.xlu0 %1929, %v2140_v14  }
  0xa7   : > { %v2254_v38 = vpop.permute.xlu1 %408 }
  0xa8   : > { %1879 = vset.pattern.permute.xlu1 %v2936_v16  ;;  %v302_v39 = vpop.permute.xlu0 %301 }
  0xa9   : > { %624 = vperm.xlu1 %1879, %v2120_v11  }
  0xaa   : > { %832 = vperm.xlu0 %1929, %v2099_v8  }
  0xac   : > { %v2265_v43 = vpop.permute.xlu1 %316  ;;  %v2267_v44 = vpop.permute.xlu0 %321 }
  0xad   : > { %1880 = vset.pattern.permute.xlu1 %v2930_v19 }
  0xae   : > { %856 = vperm.xlu0 %1929, %v2154_v17   ;;  %816 = vperm.xlu1 %1880, %v2114_v10  }
  0xb0   : > { %v2278_v49 = vpop.permute.xlu0 %331 }
  0xb1   : > { %v2280_v50 = vpop.permute.xlu1 %412 }
  0xb2   : > { %1931 = vset.pattern.permute.xlu0 %v2934_v22  ;;  %1881 = vset.pattern.permute.xlu1 %v2932_v1 }
  0xb3   : > { %1004 = vperm.xlu0 %1931, %v2080_v2   ;;  %346 = vperm.xlu1 %1881, %v2104_v9   ;;  %v1150_v2 = vld [vmem:[%s2923_s3 + $0x60] sm:$0xff] }
  0xb4   : > { %v2294_v55 = vpop.permute.xlu0 %356  ;;  %v1793_v31 = vpack.c.bf16 %v1151_v3, %v1150_v2  ;;  %v2382_v3 = vrot.slane %v2308_v61, %v665_v57 }
  0xb5   : > { %2945 = vst [vmem:[#allocation3_spill] sm:$0xff] %v2294_v55 }
  0xb6   : > { %v2303_v59 = vpop.permute.xlu1 %508  ;;  %1794 = vmatprep.subr.bf16.mxu0 %v1793_v31 }
  0xb7   : > { %1008 = vperm.xlu0 %1931, %v2088_v4   ;;  %1882 = vset.pattern.permute.xlu1 %v2938_v5  ;;  %v2323_v4 = vrot.slane %v2308_v61, %v381_v58 }
  0xb8   : > { %436 = vperm.xlu1 %1882, %v2104_v9   ;;  %v2314_v63 = vpop.permute.xlu0 %361  ;;  %1796 = vmatpush3.bf16.msra.mxu0 %v1793_v31 }
  0xb9   : > { %2946 = vst [vmem:[#allocation4_spill] sm:$0xff] %v2314_v63  ;;  %v383_v35 = vmul.f32 %v2323_v4, %v302_v39  ;;  %1798 = vmatprep.subr.bf16.mxu0 %v1797_v42 }
  0xba   : > { %v513_v30 = vpop.permute.xlu1 %512 }
  0xbb   : > { %1028 = vperm.xlu0 %1931, %v2140_v14  }
  0xbc   : > { %1883 = vset.pattern.permute.xlu1 %v2930_v19  ;;  %1800 = vmatpush3.bf16.msra.mxu0 %v1797_v42 }
  0xbd   : > { %v401_v36 = vpop.permute.xlu0 %400  ;;  %820 = vperm.xlu1 %1883, %v2157_v18  }
  0xbe   : > { %v467_v41 = vmul.f32 %v2327_v33, %v401_v36 }
  0xbf   : > { %1032 = vperm.xlu0 %1931, %v2099_v8   ;;  %v2340_v39 = vpop.permute.xlu1 %704  ;;  %v565_v8 = vsub.s32 2, %v2288_v53 }
  0xc0   : > { %v483_v45 = vadd.f32 %v467_v41, %v383_v35  ;;  %v470_v41 = vmul.f32 %v2327_v33, %v2280_v50 }
  0xc1   : > { %1884 = vset.pattern.permute.xlu1 %v2934_v22  ;;  %v2343_v46 = vpop.permute.xlu0 %428  ;;  %v2367_v56 = vrot.slane %v2308_v61, %v565_v8  ;;  %v386_v8 = vmul.f32 %v2323_v4, %v2265_v43 }
  0xc2   : > { %1012 = vperm.xlu1 %1884, %v2094_v6   ;;  %v765_v6 = vsub.s32 4, %v2288_v53 }
  0xc3   : > { %1040 = vperm.xlu0 %1931, %v2347_v47   ;;  %v567_v2 = vmul.f32 %v2367_v56, %v2227_v28  ;;  %v486_v57 = vadd.f32 %v470_v41, %v386_v8 }
  0xc4   : > { %v2350_v48 = vpop.permute.xlu1 %416  ;;  %v2377_v62 = vrot.slane %v2308_v61, %v765_v6 }
  0xc5   : > { %v2352_v51 = vpop.permute.xlu0 %432  ;;  %v583_v36 = vadd.f32 %v567_v2, %v483_v45 }
  0xc6   : > { %1885 = vset.pattern.permute.xlu1 %v2928_v0  ;;  %v767_v35 = vmul.f32 %v2377_v62, %v2212_v24  ;;  %v570_v24 = vmul.f32 %v2367_v56, %v513_v30  ;;  %v770_v50 = vmul.f32 %v2377_v62, %v2224_v27 }
  0xc7   : > { %724 = vperm.xlu1 %1885, %v2120_v11   ;;  %1044 = vperm.xlu0 %1931, %v2126_v12  }
  0xc9   : > { %v2358_v52 = vpop.permute.xlu1 %608  ;;  %v2360_v54 = vpop.permute.xlu0 %452 }
  0xca   : > { %2947 = vst [vmem:[#allocation5_spill] sm:$0xff] %v2360_v54  ;;  %v474_v54 = vmul.f32 %v2327_v33, %v2343_v46 }
  0xcb   : > { %1886 = vset.pattern.permute.xlu1 %v2942_v20  ;;  %1052 = vperm.xlu0 %1931, %v2148_v15  }
  0xcc   : > { %916 = vperm.xlu1 %1886, %v2114_v10  }
  0xcd   : > { %v2370_v58 = vpop.permute.xlu0 %456 }
  0xce   : > { %2948 = vst [vmem:[#allocation6_spill] sm:$0xff] %v2370_v58  ;;  %v2372_v60 = vpop.permute.xlu1 %326 }
  0xcf   : > { %2949 = vst [vmem:[#allocation7_spill] sm:$0xff] %v2372_v60  ;;  %1056 = vperm.xlu0 %1931, %v2154_v17  }
  0xd0   : > { %1887 = vset.pattern.permute.xlu1 %v2928_v0 }
  0xd1   : > { %728 = vperm.xlu1 %1887, %v2140_v14  }
  0xd2   : > { %v601_v31 = vpop.permute.xlu0 %600 }
  0xd3   : > { %v667_v37 = vmul.f32 %v2382_v3, %v601_v31  ;;  %v2388_v40 = vpop.permute.xlu1 %420  ;;  %v586_v31 = vadd.f32 %v570_v24, %v486_v57 }
  0xd4   : > { %2950 = vst [vmem:[#allocation8_spill] sm:$0xff] %v2388_v40  ;;  %v2964_v40 = vmov 0  }
  0xd5   : > { %v683_v42 = vadd.f32 %v667_v37, %v583_v36  ;;  %1888 = vset.pattern.permute.xlu1 %v2932_v1 }
  0xd6   : > { %v2393_v28 = vpop.permute.xlu0 %604  ;;  %351 = vperm.xlu1 %1888, %v2347_v47  }
  0xd7   : > { %v2399_v45 = vadd.f32 %v767_v35, %v683_v42 }
  0xd8   : > { %v2401_v6 = vpop.permute.xlu1 %804 }
  0xda   : > { %v613_v2 = vpop.permute.xlu0 %612  ;;  %1889 = vset.pattern.permute.xlu1 %v2938_v5 }
  0xdb   : > { %v670_v36 = vmul.f32 %v2382_v3, %v613_v2  ;;  %440 = vperm.xlu1 %1889, %v2347_v47  }
  0xdd   : > { %v686_v37 = vadd.f32 %v670_v36, %v586_v31  ;;  %v2408_v43 = vpop.permute.xlu1 %516 }
  0xde   : > { %v629_v30 = vpop.permute.xlu0 %628 }
  0xdf   : > { %v2410_v35 = vadd.f32 %v770_v50, %v686_v37  ;;  %1890 = vset.pattern.permute.xlu1 %v2930_v19 }
  0xe0   : > { %824 = vperm.xlu1 %1890, %v2120_v11  }
  0xe2   : > { %v2414_v41 = vpop.permute.xlu1 %900  ;;  %v2416_v42 = vpop.permute.xlu0 %632 }
  0xe4   : > { %1891 = vset.pattern.permute.xlu1 %v2934_v22 }
  0xe5   : > { %1016 = vperm.xlu1 %1891, %v2114_v10  }
  0xe6   : > { %v2420_v27 = vpop.permute.xlu0 %652 }
  0xe7   : > { %2951 = vst [vmem:[#allocation9_spill] sm:$0xff] %v2420_v27  ;;  %v2422_v8 = vpop.permute.xlu1 %520  ;;  %v2959_v27 = vmov 3  }
  0xe8   : > { %2952 = vst [vmem:[#allocation10_spill] sm:$0xff] %v2422_v8  ;;  %v674_v8 = vmul.f32 %v2382_v3, %v629_v30 }
  0xe9   : > { %1892 = vset.pattern.permute.xlu1 %v2938_v5 }
  0xea   : > { %444 = vperm.xlu1 %1892, %v2126_v12  }
  0xeb   : > { %v505_v24 = vpop.permute.xlu0 %504 }
  0xec   : > { %v2426_v57 = vpop.permute.xlu1 %904 }
  0xee   : > { %1893 = vset.pattern.permute.xlu1 %v2936_v16 }
  0xef   : > { %636 = vperm.xlu1 %1893, %v2104_v9   ;;  %v2430_v2 = vpop.permute.xlu0 %532 }
  0xf1   : > { %v2432_v50 = vpop.permute.xlu1 %424 }
  0xf3   : > { %1894 = vset.pattern.permute.xlu1 %v2934_v22  ;;  %v2435_v10 = vpop.permute.xlu0 %536 }
  0xf4   : > { %1020 = vperm.xlu1 %1894, %v2157_v18  }
  0xf6   : > { %v2438_v31 = vpop.permute.xlu1 %616 }
  0xf7   : > { %v2440_v36 = vpop.permute.xlu0 %556 }
  0xf8   : > { %2953 = vst [vmem:[#allocation11_spill] sm:$0xff] %v2440_v36  ;;  %1895 = vset.pattern.permute.xlu1 %v2940_v7 }
  0xf9   : > { %540 = vperm.xlu1 %1895, %v2347_v47  }
  0xfb   : > { %v1001_v37 = vpop.permute.xlu1 %1000  ;;  %v2444_v0 = vpop.permute.xlu0 %560 }
  0xfc   : > { %2954 = vst [vmem:[#allocation12_spill] sm:$0xff] %v2444_v0  ;;  %v2957_v0 = vmov 1  }
  0xfd   : > { %1896 = vset.pattern.permute.xlu1 %v2942_v20 }
  0xfe   : > { %924 = vperm.xlu1 %1896, %v2120_v11  }
 0x100   : > { %v337_v19 = vpop.permute.xlu1 %336  ;;  %v2448_v1 = vpop.permute.xlu0 %908 }
 0x101   : > { %v390_v63 = vmul.f32 %v2323_v4, %v337_v19 }
 0x102   : > { %1897 = vset.pattern.permute.xlu1 %v2940_v7 }
 0x103   : > { %544 = vperm.xlu1 %1897, %v2126_v12   ;;  %v490_v60 = vadd.f32 %v474_v54, %v390_v63 }
 0x104   : > { %v2452_v18 = vpop.permute.xlu0 %912 }
 0x105   : > { %v2454_v22 = vpop.permute.xlu1 %620 }
 0x106   : > { %2955 = vst [vmem:[#allocation13_spill] sm:$0xff] %v2454_v22 }
 0x107   : > { %1899 = vset.pattern.permute.xlu1 %v2942_v20 }
 0x108   : > { %928 = vperm.xlu1 %1899, %v2140_v14   ;;  %v2458_v16 = vpop.permute.xlu0 %920 }
 0x109   : > { %2956 = vst [vmem:[#allocation14_spill] sm:$0xff] %v2458_v16  ;;  %v865_v16 = vsub.s32 5, %v2288_v53 }
 0x10a   : > { %v2460_v5 = vpop.permute.xlu1 %812 }
 0x10b   : > { %v2490_v19 = vrot.slane %v2308_v61, %v865_v16  ;;  %v384_v16 = vmul.f32 %v2323_v4, %v2210_v23  ;;  %v668_v23 = vmul.f32 %v2382_v3, %v2393_v28  ;;  %v675_v28 = vmul.f32 %v2382_v3, %v2416_v42 }
 0x10c   : > { %1901 = vset.pattern.permute.xlu1 %v2957_v0  ;;  %v2463_v36 = vpop.permute.xlu0 %932 }
 0x10d   : > { %448 = vperm.xlu1 %1901, %v2131_v13  }
 0x10f   : > { %v2466_v7 = vpop.permute.xlu1 %524 }
 0x110   : > { %v2468_v58 = vpop.permute.xlu0 %936 }
 0x111   : > { %2958 = vst [vmem:[#allocation15_spill] sm:$0xff] %v2468_v58  ;;  %1902 = vset.pattern.permute.xlu1 %v2959_v27  ;;  %v965_v58 = vsub.s32 6, %v2288_v53 }
 0x112   : > { %640 = vperm.xlu1 %1902, %v2347_v47  }
 0x114   : > { %v2472_v20 = vpop.permute.xlu1 %716  ;;  %v2474_v14 = vpop.permute.xlu0 %944 }
 0x115   : > { %2960 = vst [vmem:[#allocation16_spill] sm:$0xff] %v2472_v20  ;;  %2961 = vst [vmem:[#allocation17_spill] sm:$0xff] %v2474_v14  ;;  %v1065_v14 = vsub.s32 7, %v2288_v53 }
 0x116   : > { %1903 = vset.pattern.permute.xlu1 %v2962_v34 }
 0x117   : > { %1024 = vperm.xlu1 %1903, %v2120_v11   ;;  %v2493_v11 = vrot.slane %v2308_v61, %v965_v58  ;;  %v2499_v53 = vrot.slane %v2308_v61, %v1065_v14  ;;  %v568_v58 = vmul.f32 %v2367_v56, %v505_v24 }
 0x118   : > { %v2483_v22 = vpop.permute.xlu0 %948 }
 0x119   : > { %2963 = vst [vmem:[#allocation18_spill] sm:$0xff] %v2483_v22  ;;  %v529_v55 = vpop.permute.xlu1 %528  ;;  %v468_v22 = vmul.f32 %v2327_v33, %v2219_v26 }
 0x11a   : > { %v574_v46 = vmul.f32 %v2367_v56, %v529_v55 }
 0x11b   : > { %1904 = vset.pattern.permute.xlu1 %v2964_v40  ;;  %v484_v61 = vadd.f32 %v468_v22, %v384_v16  ;;  %v575_v22 = vmul.f32 %v2367_v56, %v2430_v2  ;;  %v385_v2 = vmul.f32 %v2323_v4, %v2241_v32 }
 0x11c   : > { %v590_v20 = vadd.f32 %v574_v46, %v490_v60  ;;  %366 = vperm.xlu1 %1904, %v2148_v15   ;;  %v967_v60 = vmul.f32 %v2493_v11, %v2414_v41 }
 0x11d   : > { %v801_v30 = vpop.permute.xlu0 %800  ;;  %v584_v24 = vadd.f32 %v568_v58, %v484_v61 }
 0x11e   : > { %v867_v55 = vmul.f32 %v2490_v19, %v801_v30  ;;  %v2502_v63 = vpop.permute.xlu1 %720  ;;  %v2504_v54 = vadd.f32 %v674_v8, %v590_v20  ;;  %v475_v20 = vmul.f32 %v2327_v33, %v2352_v51  ;;  %v1067_v8 = vmul.f32 %v2499_v53, %v1001_v37 }
 0x11f   : > { %v469_v51 = vmul.f32 %v2327_v33, %v2254_v38  ;;  %v2965_v37 = vmov 5   ;;  %v684_v61 = vadd.f32 %v668_v23, %v584_v24  ;;  %v775_v38 = vmul.f32 %v2377_v62, %v2232_v29 }
 0x120   : > { %v883_v26 = vadd.f32 %v867_v55, %v2399_v45  ;;  %1905 = vset.pattern.permute.xlu1 %v2959_v27  ;;  %v2522_v45 = vld [vmem:[%s2922_s2] ss:$0 sm:$0xff]  ;;  %v975_v29 = vmul.f32 %v2493_v11, %v2463_v36 }
 0x121   : > { %v809_v14 = vpop.permute.xlu0 %808  ;;  %644 = vperm.xlu1 %1905, %v2126_v12   ;;  %v485_v42 = vadd.f32 %v469_v51, %v385_v2 }
 0x122   : > { %v983_v46 = vadd.f32 %v967_v60, %v883_v26  ;;  %v569_v26 = vmul.f32 %v2367_v56, %v2303_v59  ;;  %v2966_v59 = vmov 2  }
 0x123   : > { %v342_v30 = vpop.permute.xlu1 %341 }
 0x124   : > { %v391_v41 = vmul.f32 %v2323_v4, %v342_v30  ;;  %v1083_v55 = vadd.f32 %v1067_v8, %v983_v46  ;;  %v669_v30 = vmul.f32 %v2382_v3, %v2358_v52  ;;  %v585_v23 = vadd.f32 %v569_v26, %v485_v42 }
 0x125   : > { %1906 = vset.pattern.permute.xlu1 %v2965_v37  ;;  %v2530_v16 = vpop.permute.xlu0 %828  ;;  %v868_v52 = vmul.f32 %v2490_v19, %v2401_v6  ;;  %v869_v26 = vmul.f32 %v2490_v19, %v809_v14 }
 0x126   : > { %v491_v58 = vadd.f32 %v475_v20, %v391_v41  ;;  %836 = vperm.xlu1 %1906, %v2104_v9   ;;  %v1106_v60 = vadd.f32 %v2522_v45, %v1083_v55  ;;  %v768_v20 = vmul.f32 %v2377_v62, %v2340_v39  ;;  %v769_v39 = vmul.f32 %v2377_v62, %v2217_v25 }
 0x127   : > { %v685_v51 = vadd.f32 %v669_v30, %v585_v23  ;;  %v968_v25 = vmul.f32 %v2493_v11, %v2426_v57  ;;  %v969_v30 = vmul.f32 %v2493_v11, %v2448_v1 }
 0x128   : > { %v591_v8 = vadd.f32 %v575_v22, %v491_v58  ;;  %v2542_v46 = vpop.permute.xlu1 %624  ;;  %1936 = vtanh.f32 %v1106_v60  ;;  %v784_v24 = vadd.f32 %v768_v20, %v684_v61  ;;  %v2967_v61 = vmov 4  }
 0x129   : > { %v833_v41 = vpop.permute.xlu0 %832 }
 0x12a   : > { %v691_v32 = vadd.f32 %v675_v28, %v591_v8  ;;  %v875_v55 = vmul.f32 %v2490_v19, %v833_v41  ;;  %1907 = vset.pattern.permute.xlu1 %v2966_v59  ;;  %v884_v2 = vadd.f32 %v868_v52, %v784_v24 }
 0x12b   : > { %548 = vperm.xlu1 %1907, %v2131_v13  }
 0x12c   : > { %v791_v22 = vadd.f32 %v775_v38, %v691_v32  ;;  %v785_v38 = vadd.f32 %v769_v39, %v685_v51  ;;  %v984_v20 = vadd.f32 %v968_v25, %v884_v2 }
 0x12d   : > { %v2557_v28 = vpop.permute.xlu1 %816  ;;  %v2559_v58 = vpop.permute.xlu0 %856 }
 0x12e   : > { %v891_v60 = vadd.f32 %v875_v55, %v791_v22  ;;  %v885_v41 = vadd.f32 %v869_v26, %v785_v38  ;;  %v576_v22 = vmul.f32 %v2367_v56, %v2435_v10  ;;  %v970_v10 = vmul.f32 %v2493_v11, %v2452_v18 }
 0x12f   : > { %1908 = vset.pattern.permute.xlu1 %v2967_v61  ;;  %v473_v38 = vmul.f32 %v2327_v33, %v2432_v50 }
 0x130   : > { %740 = vperm.xlu1 %1908, %v2347_v47   ;;  %v2564_v36 = vadd.f32 %v975_v29, %v891_v60  ;;  %v985_v23 = vadd.f32 %v969_v30, %v885_v41 }
 0x132   : > { %v1937_v8 = vpop.eup %1936  ;;  %v1005_v6 = vpop.permute.xlu0 %1004 }
 0x133   : > { %v347_v42 = vpop.permute.xlu1 %346  ;;  %v1068_v14 = vmul.f32 %v2499_v53, %v1005_v6  ;;  %1689 = vmatprep.mubr.f32.mxu0 %v1937_v8  ;;  %v573_v8 = vmul.f32 %v2367_v56, %v2466_v7 }
 0x134   : > { %1909 = vset.pattern.permute.xlu1 %v2966_v59  ;;  %v392_v1 = vmul.f32 %v2323_v4, %v347_v42  ;;  %v870_v59 = vmul.f32 %v2490_v19, %v2460_v5  ;;  %v389_v5 = vmul.f32 %v2323_v4, %v2278_v49 }
 0x135   : > { %v1084_v32 = vadd.f32 %v1068_v14, %v984_v20  ;;  %552 = vperm.xlu1 %1909, %v2148_v15  }
 0x136   : > { %v1009_v55 = vpop.permute.xlu0 %1008  ;;  %v886_v25 = vadd.f32 %v870_v59, %v2410_v35  ;;  %v489_v30 = vadd.f32 %v473_v38, %v389_v5  ;;  %v673_v35 = vmul.f32 %v2382_v3, %v2542_v46  ;;  %v471_v59 = vmul.f32 %v2327_v33, %v2350_v48  ;;  %v2968_v48 = vld [vmem:[#allocation16_spill] sm:$0xff] }
 0x137   : > { %v1107_v57 = vadd.f32 %v2522_v45, %v1084_v32  ;;  %v1069_v24 = vmul.f32 %v2499_v53, %v1009_v55  ;;  %v437_v29 = vpop.permute.xlu1 %436 }
 0x138   : > { %v476_v39 = vmul.f32 %v2327_v33, %v437_v29  ;;  %v986_v42 = vadd.f32 %v970_v10, %v886_v25  ;;  %v589_v50 = vadd.f32 %v573_v8, %v489_v30  ;;  %v771_v25 = vmul.f32 %v2377_v62, %v2968_v48 }
 0x139   : > { %1938 = vtanh.f32 %v1107_v57  ;;  %v1085_v51 = vadd.f32 %v1069_v24, %v985_v23  ;;  %1910 = vset.pattern.permute.xlu1 %v2967_v61  ;;  %v874_v24 = vmul.f32 %v2490_v19, %v2530_v16 }
 0x13a   : > { %v492_v52 = vadd.f32 %v476_v39, %v392_v1  ;;  %744 = vperm.xlu1 %1910, %v2126_v12   ;;  %v689_v32 = vadd.f32 %v673_v35, %v589_v50  ;;  %v2970_v35 = vld [vmem:[#allocation7_spill] sm:$0xff] }
 0x13b   : > { %v1108_v60 = vadd.f32 %v2522_v45, %v1085_v51 }
 0x13c   : > { %v2584_v2 = vpop.permute.xlu1 %820  ;;  %v2586_v26 = vadd.f32 %v576_v22, %v492_v52  ;;  %v671_v52 = vmul.f32 %v2382_v3, %v2438_v31 }
 0x13d   : > { %1940 = vtanh.f32 %v1108_v60 }
 0x13e   : > { %1911 = vset.pattern.permute.xlu1 %v2964_v40 }
 0x13f   : > { %371 = vperm.xlu1 %1911, %v2154_v17  }
 0x141   : > { %v1013_v6 = vpop.permute.xlu1 %1012 }
 0x142   : > { %v1070_v20 = vmul.f32 %v2499_v53, %v1013_v6 }
 0x143   : > { %v1939_v18 = vpop.eup %1938  ;;  %1913 = vset.pattern.permute.xlu1 %v2959_v27 }
 0x144   : > { %v1086_v49 = vadd.f32 %v1070_v20, %v986_v42  ;;  %648 = vperm.xlu1 %1913, %v2131_v13   ;;  %1690 = vmatmul.mubr.f32.vlgmr.msra.gmra.mrb[0].mxu0 %v1939_v18  ;;  %v2969_v42 = vld [vmem:[#allocation8_spill] sm:$0xff] }
 0x145   : > { %v472_v20 = vmul.f32 %v2327_v33, %v2969_v42 }
 0x146   : > { %v1109_v41 = vadd.f32 %v2522_v45, %v1086_v49  ;;  %v725_v14 = vpop.permute.xlu1 %724  ;;  %v2971_v49 = vld [vmem:[#allocation10_spill] sm:$0xff] }
 0x147   : > { %v1941_v7 = vpop.eup %1940  ;;  %v773_v55 = vmul.f32 %v2377_v62, %v725_v14  ;;  %v572_v50 = vmul.f32 %v2367_v56, %v2971_v49 }
 0x148   : > { %1942 = vtanh.f32 %v1109_v41  ;;  %1914 = vset.pattern.permute.xlu1 %v2965_v37  ;;  %1692 = vmatprep.mubr.f32.mxu0 %v1941_v7  ;;  %v2972_v41 = vmov 6   ;;  %v2973_v7 = vld [vmem:[#allocation3_spill] sm:$0xff] }
 0x149   : > { %v2607_v57 = vadd.f32 %v773_v55, %v689_v32  ;;  %840 = vperm.xlu1 %1914, %v2347_v47   ;;  %v394_v32 = vmul.f32 %v2323_v4, %v2973_v7  ;;  %v1029_v7 = vpop.permute.xlu0 %1028 }
 0x14b   : > { %v917_v46 = vpop.permute.xlu1 %916 }
 0x14c   : > { %v971_v8 = vmul.f32 %v2493_v11, %v917_v46  ;;  %v2974_v46 = vld [vmem:[#allocation13_spill] sm:$0xff] }
 0x14d   : > { %1915 = vset.pattern.permute.xlu1 %v2964_v40  ;;  %v387_v40 = vmul.f32 %v2323_v4, %v2267_v44 }
 0x14e   : > { %376 = vperm.xlu1 %1915, %v2191_v21  }
 0x14f   : > { %v487_v16 = vadd.f32 %v471_v59, %v387_v40  ;;  %v872_v40 = vmul.f32 %v2490_v19, %v2584_v2 }
 0x150   : > { %v729_v23 = vpop.permute.xlu1 %728 }
 0x151   : > { %v774_v29 = vmul.f32 %v2377_v62, %v729_v23  ;;  %v672_v23 = vmul.f32 %v2382_v3, %v2974_v46  ;;  %v2977_v46 = vld [vmem:[#allocation4_spill] sm:$0xff] }
 0x152   : > { %v1943_v22 = vpop.eup %1942  ;;  %1916 = vset.pattern.permute.xlu1 %v2957_v0  ;;  %v571_v0 = vmul.f32 %v2367_v56, %v2408_v43  ;;  %v871_v43 = vmul.f32 %v2490_v19, %v2557_v28  ;;  %v388_v28 = vmul.f32 %v2323_v4, %v2970_v35  ;;  %v1322_v35 = vld [vmem:[%s2925_s5] sm:$0xff] }
 0x153   : > { %v790_v1 = vadd.f32 %v774_v29, %v2504_v54  ;;  %460 = vperm.xlu1 %1916, %v2191_v21   ;;  %1693 = vmatmul.mubr.f32.gmra.mrb[2].mxu0 %v1943_v22 }
 0x154   : > { %v587_v44 = vadd.f32 %v571_v0, %v487_v16  ;;  %v488_v55 = vadd.f32 %v472_v20, %v388_v28 }
 0x155   : > { %v352_v39 = vpop.permute.xlu1 %351  ;;  %v2618_v51 = vadd.f32 %v874_v24, %v790_v1  ;;  %v772_v1 = vmul.f32 %v2377_v62, %v2502_v63 }
 0x156   : > { %v393_v60 = vmul.f32 %v2323_v4, %v352_v39  ;;  %v588_v22 = vadd.f32 %v572_v50, %v488_v55  ;;  %v1325_v50 = vld [vmem:[%s2925_s5 + $0x18] sm:$0xff]  ;;  %v1327_v55 = vld [vmem:[%s2925_s5 + $0x28] sm:$0xff] }
 0x157   : > { %1918 = vset.pattern.permute.xlu1 %v2965_v37 }
 0x158   : > { %844 = vperm.xlu1 %1918, %v2126_v12   ;;  %v687_v12 = vadd.f32 %v671_v52, %v587_v44  ;;  %v2975_v52 = vld [vmem:[#allocation14_spill] sm:$0xff] }
 0x15a   : > { %v441_v54 = vpop.permute.xlu1 %440  ;;  %v787_v31 = vadd.f32 %v771_v25, %v687_v12 }
 0x15b   : > { %v477_v10 = vmul.f32 %v2327_v33, %v441_v54 }
 0x15c   : > { %1919 = vset.pattern.permute.xlu1 %v2962_v34  ;;  %v887_v6 = vadd.f32 %v871_v43, %v787_v31 }
 0x15d   : > { %v493_v5 = vadd.f32 %v477_v10, %v393_v60  ;;  %1036 = vperm.xlu1 %1919, %v2104_v9   ;;  %v972_v60 = vmul.f32 %v2493_v11, %v2975_v52  ;;  %v2976_v10 = vld [vmem:[#allocation2_spill] sm:$0xff] }
 0x15e   : > { %v987_v30 = vadd.f32 %v971_v8, %v887_v6  ;;  %v776_v44 = vmul.f32 %v2377_v62, %v2976_v10  ;;  %v2000_v10 = vld [vmem:[%s2077_s30 + $0x60] sm:$0xff] }
 0x15f   : > { %v2638_v38 = vpop.permute.xlu1 %824 }
 0x161   : > { %1920 = vset.pattern.permute.xlu1 %v2967_v61 }
 0x162   : > { %748 = vperm.xlu1 %1920, %v2131_v13  }
 0x164   : > { %v1017_v18 = vpop.permute.xlu1 %1016 }
 0x165   : > { %v1071_v9 = vmul.f32 %v2499_v53, %v1017_v18 }
 0x166   : > { %1921 = vset.pattern.permute.xlu1 %v2972_v41 }
 0x167   : > { %v1087_v14 = vadd.f32 %v1071_v9, %v987_v30  ;;  %940 = vperm.xlu1 %1921, %v2347_v47   ;;  %v688_v47 = vadd.f32 %v672_v23, %v588_v22  ;;  %v395_v23 = vmul.f32 %v2323_v4, %v2977_v46 }
 0x169   : > { %v1110_v24 = vadd.f32 %v2522_v45, %v1087_v14  ;;  %v445_v29 = vpop.permute.xlu1 %444  ;;  %v788_v0 = vadd.f32 %v772_v1, %v688_v47  ;;  %v1328_v47 = vld [vmem:[%s2925_s5 + $0x30] sm:$0xff] }
 0x16a   : > { %v478_v39 = vmul.f32 %v2327_v33, %v445_v29 }
 0x16b   : > { %1944 = vtanh.f32 %v1110_v24  ;;  %1923 = vset.pattern.permute.xlu1 %v2967_v61  ;;  %v888_v63 = vadd.f32 %v872_v40, %v788_v0  ;;  %v1329_v40 = vld [vmem:[%s2925_s5 + $0x38] sm:$0xff] }
 0x16c   : > { %v494_v59 = vadd.f32 %v478_v39, %v394_v32  ;;  %752 = vperm.xlu1 %1923, %v2148_v15   ;;  %v1033_v39 = vpop.permute.xlu0 %1032 }
 0x16d   : > { %v988_v12 = vadd.f32 %v972_v60, %v888_v63  ;;  %v1075_v60 = vmul.f32 %v2499_v53, %v1033_v39 }
 0x16e   : > { %v637_v54 = vpop.permute.xlu1 %636 }
 0x16f   : > { %v676_v16 = vmul.f32 %v2382_v3, %v637_v54  ;;  %v1813_v54 = vpack.c.bf16 %v1329_v40, %v1328_v47 }
 0x170   : > { %1924 = vset.pattern.permute.xlu1 %v2959_v27 }
 0x171   : > { %v692_v48 = vadd.f32 %v676_v16, %v2586_v26  ;;  %656 = vperm.xlu1 %1924, %v2154_v17  }
 0x173   : > { %v1021_v2 = vpop.permute.xlu1 %1020  ;;  %v2672_v25 = vadd.f32 %v776_v44, %v692_v48 }
 0x174   : > { %v1072_v43 = vmul.f32 %v2499_v53, %v1021_v2 }
 0x175   : > { %v1945_v31 = vpop.eup %1944  ;;  %1925 = vset.pattern.permute.xlu1 %v2965_v37 }
 0x176   : > { %v1088_v8 = vadd.f32 %v1072_v43, %v988_v12  ;;  %848 = vperm.xlu1 %1925, %v2131_v13   ;;  %1695 = vmatprep.mubr.f32.mxu0 %v1945_v31  ;;  %v1091_v31 = vadd.f32 %v1075_v60, %v2564_v36 }
 0x178   : > { %v1111_v6 = vadd.f32 %v2522_v45, %v1088_v8  ;;  %v541_v42 = vpop.permute.xlu1 %540 }
 0x179   : > { %v577_v26 = vmul.f32 %v2367_v56, %v541_v42  ;;  %v1332_v42 = vld [vmem:[%s2925_s5 + $0x50] sm:$0xff] }
 0x17a   : > { %1946 = vtanh.f32 %v1111_v6  ;;  %1926 = vset.pattern.permute.xlu1 %v2959_v27  ;;  %v1323_v27 = vld [vmem:[%s2925_s5 + $0x8] sm:$0xff] }
 0x17b   : > { %v593_v20 = vadd.f32 %v577_v26, %v493_v5  ;;  %660 = vperm.xlu1 %1926, %v2191_v21   ;;  %v1801_v28 = vpack.c.bf16 %v1323_v27, %v1322_v35  ;;  %v1334_v35 = vld [vmem:[%s2925_s5 + $0x60] sm:$0xff]  ;;  %v1335_v27 = vld [vmem:[%s2925_s5 + $0x68] sm:$0xff] }
 0x17d   : > { %v925_v18 = vpop.permute.xlu1 %924  ;;  %1802 = vmatprep.subr.bf16.mxu1 %v1801_v28 }
 0x17e   : > { %1804 = vmatpush3.bf16.msra.mxu1 %v1801_v28  ;;  %v973_v63 = vmul.f32 %v2493_v11, %v925_v18  ;;  %v1114_v18 = vadd.f32 %v2522_v45, %v1091_v31  ;;  %v2001_v28 = vld [vmem:[%s2077_s30 + $0x70] sm:$0xff] }
 0x17f   : > { %1927 = vset.pattern.permute.xlu1 %v2965_v37 }
 0x180   : > { %852 = vperm.xlu1 %1927, %v2148_v15  }
 0x182   : > { %v545_v30 = vpop.permute.xlu1 %544 }
 0x183   : > { %v578_v13 = vmul.f32 %v2367_v56, %v545_v30 }
 0x184   : > { %v1947_v9 = vpop.eup %1946  ;;  %1928 = vset.pattern.permute.xlu1 %v2967_v61  ;;  %v1324_v61 = vld [vmem:[%s2925_s5 + $0x10] sm:$0xff] }
 0x185   : > { %v2691_v5 = vadd.f32 %v578_v13, %v494_v59  ;;  %756 = vperm.xlu1 %1928, %v2154_v17   ;;  %1696 = vmatmul.mubr.f32.gmra.mrb[4].mxu0 %v1947_v9  ;;  %v1805_v14 = vpack.c.bf16 %v1325_v50, %v1324_v61  ;;  %v1326_v17 = vld [vmem:[%s2925_s5 + $0x20] sm:$0xff]  ;;  %v873_v59 = vmul.f32 %v2490_v19, %v2638_v38 }
 0x186   : > { %v1809_v29 = vpack.c.bf16 %v1327_v55, %v1326_v17  ;;  %v1330_v38 = vld [vmem:[%s2925_s5 + $0x40] sm:$0xff]  ;;  %v2979_v55 = vld [vmem:[#allocation15_spill] sm:$0xff] }
 0x187   : > { %v929_v49 = vpop.permute.xlu1 %928  ;;  %1806 = vmatprep.subr.bf16.mxu1 %v1805_v14  ;;  %v889_v48 = vadd.f32 %v873_v59, %v2607_v57  ;;  %v1333_v57 = vld [vmem:[%s2925_s5 + $0x58] sm:$0xff]  ;;  %v976_v46 = vmul.f32 %v2493_v11, %v2979_v55 }
 0x188   : > { %1808 = vmatpush3.bf16.msra.mxu1 %v1805_v14  ;;  %v974_v22 = vmul.f32 %v2493_v11, %v929_v49  ;;  %v1821_v36 = vpack.c.bf16 %v1333_v57, %v1332_v42  ;;  %v1825_v49 = vpack.c.bf16 %v1335_v27, %v1334_v35  ;;  %v1337_v14 = vld [vmem:[%s2925_s5 + $0x78] sm:$0xff] }
 0x189   : > { %760 = vperm.xlu1 %1928, %v2191_v21   ;;  %1810 = vmatprep.subr.bf16.mxu1 %v1809_v29  ;;  %v989_v8 = vadd.f32 %v973_v63, %v889_v48  ;;  %v2982_v48 = vld [vmem:[#allocation11_spill] sm:$0xff] }
 0x18a   : > { %v990_v16 = vadd.f32 %v974_v22, %v2618_v51  ;;  %v1331_v51 = vld [vmem:[%s2925_s5 + $0x48] sm:$0xff] }
 0x18b   : > { %v1817_v2 = vpack.c.bf16 %v1331_v51, %v1330_v38  ;;  %v2981_v38 = vld [vmem:[#allocation6_spill] sm:$0xff] }
 0x18c   : > { %v449_v32 = vpop.permute.xlu1 %448  ;;  %1812 = vmatpush3.bf16.msra.mxu1 %v1809_v29  ;;  %v481_v51 = vmul.f32 %v2327_v33, %v2981_v38  ;;  %v2985_v38 = vld [vmem:[#allocation18_spill] sm:$0xff] }
 0x18d   : > { %v479_v24 = vmul.f32 %v2327_v33, %v449_v32  ;;  %1930 = vset.pattern.permute.xlu1 %v2972_v41  ;;  %1814 = vmatprep.subr.bf16.mxu1 %v1813_v54 }
 0x18e   : > { %952 = vperm.xlu1 %1930, %v2148_v15   ;;  %v1074_v15 = vmul.f32 %v2499_v53, %v1029_v7  ;;  %v2002_v7 = vld [vmem:[%s2077_s30 + $0x78] sm:$0xff] }
 0x18f   : > { %v2713_v1 = vadd.f32 %v479_v24, %v395_v23 }
 0x190   : > { %1816 = vmatpush3.bf16.msra.mxu1 %v1813_v54  ;;  %v1090_v12 = vadd.f32 %v1074_v15, %v990_v16  ;;  %v2980_v16 = vld [vmem:[#allocation9_spill] sm:$0xff] }
 0x191   : > { %v641_v0 = vpop.permute.xlu1 %640  ;;  %1818 = vmatprep.subr.bf16.mxu1 %v1817_v2 }
 0x192   : > { %v677_v52 = vmul.f32 %v2382_v3, %v641_v0  ;;  %1932 = vset.pattern.permute.xlu1 %v2962_v34 }
 0x193   : > { %1048 = vperm.xlu1 %1932, %v2000_v10  }
 0x194   : > { %v2730_v44 = vadd.f32 %v677_v52, %v593_v20  ;;  %1820 = vmatpush3.bf16.msra.mxu1 %v1817_v2  ;;  %v1113_v20 = vadd.f32 %v2522_v45, %v1090_v12  ;;  %v680_v52 = vmul.f32 %v2382_v3, %v2980_v16  ;;  %v581_v2 = vmul.f32 %v2367_v56, %v2982_v48 }
 0x195   : > { %1822 = vmatprep.subr.bf16.mxu1 %v1821_v36 }
 0x196   : > { %v1025_v43 = vpop.permute.xlu1 %1024 }
 0x197   : > { %v1073_v6 = vmul.f32 %v2499_v53, %v1025_v43  ;;  %1933 = vset.pattern.permute.xlu1 %v2965_v37 }
 0x198   : > { %860 = vperm.xlu1 %1933, %v2191_v21   ;;  %v2978_v21 = vld [vmem:[#allocation5_spill] sm:$0xff]  ;;  %1824 = vmatpush3.bf16.msra.mxu1 %v1821_v36 }
 0x199   : > { %v1089_v26 = vadd.f32 %v1073_v6, %v989_v8  ;;  %v480_v13 = vmul.f32 %v2327_v33, %v2978_v21  ;;  %1826 = vmatprep.subr.bf16.mxu1 %v1825_v49 }
 0x19b   : > { %v1112_v37 = vadd.f32 %v2522_v45, %v1089_v26  ;;  %v367_v30 = vpop.permute.xlu1 %366 }
 0x19c   : > { %v396_v9 = vmul.f32 %v2323_v4, %v367_v30  ;;  %1934 = vset.pattern.permute.xlu1 %v2972_v41  ;;  %1828 = vmatpush3.bf16.msra.mxu1 %v1825_v49  ;;  %v1336_v41 = vld [vmem:[%s2925_s5 + $0x70] sm:$0xff] }
 0x19d   : > { %1948 = vtanh.f32 %v1112_v37  ;;  %956 = vperm.xlu1 %1934, %v2001_v28   ;;  %v1829_v32 = vpack.c.bf16 %v1337_v14, %v1336_v41  ;;  %v2983_v30 = vld [vmem:[#allocation12_spill] sm:$0xff]  ;;  %v1041_v41 = vpop.permute.xlu0 %1040 }
 0x19e   : > { %1950 = vtanh.f32 %v1113_v20  ;;  %v496_v61 = vadd.f32 %v480_v13, %v396_v9  ;;  %v582_v21 = vmul.f32 %v2367_v56, %v2983_v30 }
 0x19f   : > { %1952 = vtanh.f32 %v1114_v18  ;;  %1830 = vmatprep.subr.bf16.mxu1 %v1829_v32 }
 0x1a0   : > { %v645_v50 = vpop.permute.xlu1 %644  ;;  %1832 = vmatpush3.bf16.msra.mxu1 %v1829_v32 }
 0x1a1   : > { %960 = vperm.xlu1 %1934, %v2002_v7   ;;  %v678_v26 = vmul.f32 %v2382_v3, %v645_v50 }
 0x1a3   : > { %v694_v9 = vadd.f32 %v678_v26, %v2691_v5 }
 0x1a5   : > { %1935 = vset.pattern.permute.xlu1 %v2962_v34  ;;  %v837_v17 = vpop.permute.xlu1 %836 }
 0x1a6   : > { %v876_v23 = vmul.f32 %v2490_v19, %v837_v17  ;;  %1060 = vperm.xlu1 %1935, %v2002_v7   ;;  %v1045_v17 = vpop.permute.xlu0 %1044 }
 0x1a7   : > { %v1949_v24 = vpop.eup %1948 }
 0x1a8   : > { %v1951_v29 = vpop.eup %1950  ;;  %v892_v22 = vadd.f32 %v876_v23, %v2672_v25  ;;  %1698 = vmatprep.mubr.f32.mxu0 %v1949_v24  ;;  %v1078_v23 = vmul.f32 %v2499_v53, %v1045_v17 }
 0x1a9   : > { %v1953_v39 = vpop.eup %1952  ;;  %1699 = vmatmul.mubr.f32.gmra.mrb[6].mxu0 %v1951_v29 }
 0x1aa   : > { %1701 = vmatprep.mubr.f32.mxu0 %v1953_v39  ;;  %v549_v47 = vpop.permute.xlu1 %548  ;;  %v992_v40 = vadd.f32 %v976_v46, %v892_v22  ;;  %v1077_v39 = vmul.f32 %v2499_v53, %v1041_v41 }
 0x1ab   : > { %v579_v59 = vmul.f32 %v2367_v56, %v549_v47 }
 0x1ad   : > { %v595_v34 = vadd.f32 %v579_v59, %v2713_v1 }
 0x1af   : > { %v741_v0 = vpop.permute.xlu1 %740 }
 0x1b4   : > { %v553_v54 = vpop.permute.xlu1 %552 }
 0x1b5   : > { %v580_v15 = vmul.f32 %v2367_v56, %v553_v54  ;;  %v777_v56 = vmul.f32 %v2377_v62, %v741_v0 }
 0x1b7   : > { %v596_v60 = vadd.f32 %v580_v15, %v496_v61  ;;  %v2984_v61 = vld [vmem:[#allocation17_spill] sm:$0xff]  ;;  %v793_v24 = vadd.f32 %v777_v56, %v2730_v44 }
 0x1b8   : > { %v978_v50 = vmul.f32 %v2493_v11, %v2984_v61 }
 0x1b9   : > { %v745_v63 = vpop.permute.xlu1 %744  ;;  %v2780_v25 = vadd.f32 %v680_v52, %v596_v60 }
 0x1ba   : > { %v778_v37 = vmul.f32 %v2377_v62, %v745_v63 }
 0x1bc   : > { %v794_v28 = vadd.f32 %v778_v37, %v694_v9 }
 0x1be   : > { %v372_v10 = vpop.permute.xlu1 %371 }
 0x1bf   : > { %v397_v1 = vmul.f32 %v2323_v4, %v372_v10 }
 0x1c1   : > { %v497_v12 = vadd.f32 %v481_v51, %v397_v1  ;;  %v979_v51 = vmul.f32 %v2493_v11, %v2985_v38 }
 0x1c3   : > { %v649_v43 = vpop.permute.xlu1 %648  ;;  %v597_v31 = vadd.f32 %v581_v2, %v497_v12 }
 0x1c4   : > { %v679_v8 = vmul.f32 %v2382_v3, %v649_v43 }
 0x1c6   : > { %v695_v6 = vadd.f32 %v679_v8, %v595_v34 }
 0x1c8   : > { %v841_v42 = vpop.permute.xlu1 %840 }
 0x1c9   : > { %v877_v46 = vmul.f32 %v2490_v19, %v841_v42 }
 0x1cb   : > { %v893_v22 = vadd.f32 %v877_v46, %v793_v24 }
 0x1cd   : > { %v377_v57 = vpop.permute.xlu1 %376 }
 0x1ce   : > { %v398_v20 = vmul.f32 %v2323_v4, %v377_v57 }
 0x1d2   : > { %v461_v36 = vpop.permute.xlu1 %460 }
 0x1d3   : > { %v482_v18 = vmul.f32 %v2327_v33, %v461_v36 }
 0x1d5   : > { %v498_v13 = vadd.f32 %v482_v18, %v398_v20 }
 0x1d7   : > { %v845_v35 = vpop.permute.xlu1 %844  ;;  %v2795_v27 = vadd.f32 %v582_v21, %v498_v13 }
 0x1d8   : > { %v878_v49 = vmul.f32 %v2490_v19, %v845_v35 }
 0x1da   : > { %v894_v4 = vadd.f32 %v878_v49, %v794_v28  ;;  %v1053_v49 = vpop.permute.xlu0 %1052 }
 0x1dc   : > { %v994_v33 = vadd.f32 %v978_v50, %v894_v4  ;;  %v1037_v14 = vpop.permute.xlu1 %1036 }
 0x1dd   : > { %v1076_v7 = vmul.f32 %v2499_v53, %v1037_v14 }
 0x1de   : > { %v1057_v46 = vpop.permute.xlu0 %1056 }
 0x1df   : > { %v1092_v32 = vadd.f32 %v1076_v7, %v992_v40  ;;  %v1094_v40 = vadd.f32 %v1078_v23, %v994_v33  ;;  %v2827_v33 = vld [vmem:[%s2924_s4] ss:$0 sm:$0xff] }
 0x1e1   : > { %v1115_v5 = vadd.f32 %v2522_v45, %v1092_v32  ;;  %v749_v55 = vpop.permute.xlu1 %748  ;;  %v1117_v54 = vadd.f32 %v2522_v45, %v1094_v40 }
 0x1e2   : > { %v779_v44 = vmul.f32 %v2377_v62, %v749_v55 }
 0x1e3   : > { %1954 = vtanh.f32 %v1115_v5 }
 0x1e4   : > { %v795_v63 = vadd.f32 %v779_v44, %v695_v6  ;;  %v881_v6 = vmul.f32 %v2490_v19, %v2559_v58 }
 0x1e6   : > { %v941_v29 = vpop.permute.xlu1 %940 }
 0x1e7   : > { %v977_v47 = vmul.f32 %v2493_v11, %v941_v29 }
 0x1e9   : > { %v993_v59 = vadd.f32 %v977_v47, %v893_v22  ;;  %v1081_v22 = vmul.f32 %v2499_v53, %v1057_v46 }
 0x1eb   : > { %v1093_v34 = vadd.f32 %v1077_v39, %v993_v59  ;;  %v753_v0 = vpop.permute.xlu1 %752 }
 0x1ec   : > { %v780_v18 = vmul.f32 %v2377_v62, %v753_v0 }
 0x1ed   : > { %v1955_v15 = vpop.eup %1954  ;;  %v1116_v16 = vadd.f32 %v2522_v45, %v1093_v34 }
 0x1ee   : > { %1702 = vmatmul.mubr.f32.gmra.mrb[8].mxu0 %v1955_v15  ;;  %v796_v13 = vadd.f32 %v780_v18, %v2780_v25 }
 0x1ef   : > { %1956 = vtanh.f32 %v1116_v16 }
 0x1f0   : > { %1958 = vtanh.f32 %v1117_v54  ;;  %v657_v52 = vpop.permute.xlu1 %656 }
 0x1f1   : > { %v681_v42 = vmul.f32 %v2382_v3, %v657_v52 }
 0x1f3   : > { %v697_v26 = vadd.f32 %v681_v42, %v597_v31  ;;  %v1080_v31 = vmul.f32 %v2499_v53, %v1053_v49 }
 0x1f5   : > { %v849_v60 = vpop.permute.xlu1 %848 }
 0x1f6   : > { %v879_v10 = vmul.f32 %v2490_v19, %v849_v60 }
 0x1f8   : > { %v895_v48 = vadd.f32 %v879_v10, %v795_v63 }
 0x1f9   : > { %v1957_v2 = vpop.eup %1956 }
 0x1fa   : > { %v1959_v1 = vpop.eup %1958  ;;  %1704 = vmatprep.mubr.f32.mxu0 %v1957_v2  ;;  %v661_v12 = vpop.permute.xlu1 %660  ;;  %v995_v43 = vadd.f32 %v979_v51, %v895_v48 }
 0x1fb   : > { %1705 = vmatmul.mubr.f32.gmra.mrb[10].mxu0 %v1959_v1  ;;  %v682_v55 = vmul.f32 %v2382_v3, %v661_v12 }
 0x1fd   : > { %v698_v47 = vadd.f32 %v682_v55, %v2795_v27 }
 0x1ff   : > { %v853_v8 = vpop.permute.xlu1 %852 }
 0x200   : > { %v880_v21 = vmul.f32 %v2490_v19, %v853_v8 }
 0x202   : > { %v896_v35 = vadd.f32 %v880_v21, %v796_v13 }
 0x204   : > { %v757_v57 = vpop.permute.xlu1 %756 }
 0x205   : > { %v781_v36 = vmul.f32 %v2377_v62, %v757_v57 }
 0x207   : > { %v797_v20 = vadd.f32 %v781_v36, %v697_v26 }
 0x208   : > { %v761_v37 = vpop.permute.xlu1 %760 }
 0x209   : > { %v897_v30 = vadd.f32 %v881_v6, %v797_v20  ;;  %v782_v29 = vmul.f32 %v2377_v62, %v761_v37 }
 0x20b   : > { %v798_v0 = vadd.f32 %v782_v29, %v698_v47 }
 0x20d   : > { %v953_v9 = vpop.permute.xlu1 %952 }
 0x20e   : > { %v980_v28 = vmul.f32 %v2493_v11, %v953_v9 }
 0x210   : > { %v996_v61 = vadd.f32 %v980_v28, %v896_v35 }
 0x212   : > { %v1096_v50 = vadd.f32 %v1080_v31, %v996_v61  ;;  %v1049_v4 = vpop.permute.xlu1 %1048 }
 0x213   : > { %v1079_v58 = vmul.f32 %v2499_v53, %v1049_v4 }
 0x214   : > { %v1119_v25 = vadd.f32 %v2522_v45, %v1096_v50 }
 0x215   : > { %v1095_v41 = vadd.f32 %v1079_v58, %v995_v43 }
 0x217   : > { %v1118_v14 = vadd.f32 %v2522_v45, %v1095_v41  ;;  %v1691_v7 = vpop.f32.mrb[0].mxu0  ;;  %v861_v32 = vpop.permute.xlu1 %860 }
 0x218   : > { %v1233_v56 = vadd.f32 %v1691_v7, %v2827_v33  ;;  %v1227_v17 = vpop.f32.mrb[1].mxu0  ;;  %v882_v40 = vmul.f32 %v2490_v19, %v861_v32 }
 0x219   : > { %1960 = vtanh.f32 %v1118_v14  ;;  %v1228_v5 = vadd.f32 %v2827_v33, %v1227_v17  ;;  %v2856_v14 = vld [vmem:[%s2926_s6] ss:$0 sm:$0xff] }
 0x21a   : > { %1962 = vtanh.f32 %v1119_v25  ;;  %v898_v52 = vadd.f32 %v882_v40, %v798_v0 }
 0x21b   : > { %1964 = vtanh.f32 %v1228_v5 }
 0x21c   : > { %1966 = vtanh.f32 %v1233_v56  ;;  %v957_v23 = vpop.permute.xlu1 %956 }
 0x21d   : > { %v981_v24 = vmul.f32 %v2493_v11, %v957_v23 }
 0x21f   : > { %v997_v39 = vadd.f32 %v981_v24, %v897_v30 }
 0x220   : > { %v961_v59 = vpop.permute.xlu1 %960 }
 0x221   : > { %v1097_v34 = vadd.f32 %v1081_v22, %v997_v39  ;;  %v982_v54 = vmul.f32 %v2493_v11, %v961_v59 }
 0x223   : > { %v1961_v3 = vpop.eup %1960  ;;  %v1120_v15 = vadd.f32 %v2522_v45, %v1097_v34  ;;  %v998_v63 = vadd.f32 %v982_v54, %v898_v52 }
 0x224   : > { %v1963_v16 = vpop.eup %1962  ;;  %1707 = vmatprep.mubr.f32.mxu0 %v1961_v3 }
 0x225   : > { %v1965_v44 = vpop.eup %1964  ;;  %1968 = vtanh.f32 %v1120_v15  ;;  %1708 = vmatmul.mubr.f32.gmra.mrb[12].mxu0 %v1963_v16  ;;  %v1061_v62 = vpop.permute.xlu1 %1060 }
 0x226   : > { %v1967_v60 = vpop.eup %1966  ;;  %v1082_v27 = vmul.f32 %v2499_v53, %v1061_v62  ;;  %v1694_v19 = vpop.f32.mrb[2].mxu0  ;;  %1745 = vmatprep.mubr.f32.mxu1 %v1965_v44 }
 0x227   : > { %v1243_v10 = vadd.f32 %v1694_v19, %v2827_v33  ;;  %v1237_v38 = vpop.f32.mrb[3].mxu0  ;;  %1746 = vmatmul.mubr.f32.vlgmr.msra.gmra.mrb[0].mxu1 %v1967_v60 }
 0x228   : > { %v1098_v11 = vadd.f32 %v1082_v27, %v998_v63  ;;  %v1238_v51 = vadd.f32 %v2827_v33, %v1237_v38 }
 0x22a   : > { %v1121_v48 = vadd.f32 %v2522_v45, %v1098_v11  ;;  %1970 = vtanh.f32 %v1238_v51 }
 0x22b   : > { %1972 = vtanh.f32 %v1243_v10 }
 0x22c   : > { %1974 = vtanh.f32 %v1121_v48 }
 0x22f   : > { %v1969_v2 = vpop.eup %1968 }
 0x230   : > { %1710 = vmatprep.mubr.f32.mxu0 %v1969_v2 }
 0x234   : > { %v1971_v1 = vpop.eup %1970 }
 0x235   : > { %v1973_v12 = vpop.eup %1972  ;;  %1748 = vmatprep.mubr.f32.mxu1 %v1971_v1 }
 0x236   : > { %v1975_v53 = vpop.eup %1974  ;;  %1749 = vmatmul.mubr.f32.gmra.mrb[2].mxu1 %v1973_v12 }
 0x237   : > { %1711 = vmatmul.mubr.f32.gmra.mrb[14].mxu0 %v1975_v53 }
 0x258   : > { %v1697_v43 = vpop.f32.mrb[4].mxu0 }
 0x259   : > { %v1253_v8 = vadd.f32 %v1697_v43, %v2827_v33  ;;  %v1247_v42 = vpop.f32.mrb[5].mxu0 }
 0x25a   : > { %v1248_v57 = vadd.f32 %v2827_v33, %v1247_v42 }
 0x25c   : > { %1976 = vtanh.f32 %v1248_v57 }
 0x25d   : > { %1978 = vtanh.f32 %v1253_v8 }
 0x266   : > { %v1977_v45 = vpop.eup %1976 }
 0x267   : > { %v1979_v26 = vpop.eup %1978  ;;  %1751 = vmatprep.mubr.f32.mxu1 %v1977_v45 }
 0x268   : > { %1752 = vmatmul.mubr.f32.gmra.mrb[4].mxu1 %v1979_v26 }
 0x27c   : > { %v1700_v36 = vpop.f32.mrb[6].mxu0 }
 0x27d   : > { %v1263_v6 = vadd.f32 %v1700_v36, %v2827_v33  ;;  %v1257_v20 = vpop.f32.mrb[7].mxu0 }
 0x27e   : > { %v1258_v18 = vadd.f32 %v2827_v33, %v1257_v20 }
 0x280   : > { %1980 = vtanh.f32 %v1258_v18 }
 0x281   : > { %1982 = vtanh.f32 %v1263_v6 }
 0x28a   : > { %v1981_v37 = vpop.eup %1980 }
 0x28b   : > { %v1983_v30 = vpop.eup %1982  ;;  %1754 = vmatprep.mubr.f32.mxu1 %v1981_v37 }
 0x28c   : > { %1755 = vmatmul.mubr.f32.gmra.mrb[6].mxu1 %v1983_v30 }
 0x2c1   : > { %v1703_v21 = vpop.f32.mrb[8].mxu0 }
 0x2c2   : > { %v1273_v13 = vadd.f32 %v1703_v21, %v2827_v33  ;;  %v1267_v9 = vpop.f32.mrb[9].mxu0 }
 0x2c3   : > { %v1268_v35 = vadd.f32 %v2827_v33, %v1267_v9 }
 0x2c5   : > { %1984 = vtanh.f32 %v1268_v35 }
 0x2c6   : > { %1986 = vtanh.f32 %v1273_v13 }
 0x2ce   : > { %v1706_v28 = vpop.f32.mrb[10].mxu0 }
 0x2cf   : > { %v1985_v49 = vpop.eup %1984  ;;  %v1283_v31 = vadd.f32 %v1706_v28, %v2827_v33  ;;  %v1277_v61 = vpop.f32.mrb[11].mxu0 }
 0x2d0   : > { %v1987_v50 = vpop.eup %1986  ;;  %v1278_v4 = vadd.f32 %v2827_v33, %v1277_v61  ;;  %1757 = vmatprep.mubr.f32.mxu1 %v1985_v49 }
 0x2d1   : > { %1758 = vmatmul.mubr.f32.gmra.mrb[8].mxu1 %v1987_v50 }
 0x2d2   : > { %1988 = vtanh.f32 %v1278_v4 }
 0x2d3   : > { %1990 = vtanh.f32 %v1283_v31 }
 0x2dc   : > { %v1989_v58 = vpop.eup %1988 }
 0x2dd   : > { %v1991_v41 = vpop.eup %1990  ;;  %1760 = vmatprep.mubr.f32.mxu1 %v1989_v58 }
 0x2de   : > { %1761 = vmatmul.mubr.f32.gmra.mrb[10].mxu1 %v1991_v41 }
 0x2f8   : > { %v1709_v25 = vpop.f32.mrb[12].mxu0 }
 0x2f9   : > { %v1293_v7 = vadd.f32 %v1709_v25, %v2827_v33  ;;  %v1287_v32 = vpop.f32.mrb[13].mxu0 }
 0x2fa   : > { %v1288_v56 = vadd.f32 %v2827_v33, %v1287_v32  ;;  %v1747_v17 = vpop.f32.mrb[0].mxu1 }
 0x2fb   : > { %v1491_v5 = vadd.f32 %v1747_v17, %v2856_v14  ;;  %v1404_v55 = vpop.f32.mrb[1].mxu1 }
 0x2fc   : > { %1992 = vtanh.f32 %v1288_v56  ;;  %v1490_v46 = vadd.f32 %v2856_v14, %v1404_v55 }
 0x2fd   : > { %1994 = vtanh.f32 %v1293_v7  ;;  %1508 = vst.msk [vmem:[%s2865_s25 + $0x8] sm:$0xff] %vm1506_vm0, %v1491_v5 }
 0x2fe   : > { %1507 = vst.msk [vmem:[%s2865_s25] sm:$0xff] %vm1506_vm0, %v1490_v46 }
 0x306   : > { %v1993_v23 = vpop.eup %1992 }
 0x307   : > { %v1995_v24 = vpop.eup %1994  ;;  %1763 = vmatprep.mubr.f32.mxu1 %v1993_v23 }
 0x308   : > { %1764 = vmatmul.mubr.f32.gmra.mrb[12].mxu1 %v1995_v24 }
 0x309   : > { %v1750_v29 = vpop.f32.mrb[2].mxu1 }
 0x30a   : > { %v1493_v22 = vadd.f32 %v1750_v29, %v2856_v14  ;;  %v1712_v39 = vpop.f32.mrb[14].mxu0  ;;  %v1414_v47 = vpop.f32.mrb[3].mxu1 }
 0x30b   : > { %v1303_v40 = vadd.f32 %v1712_v39, %v2827_v33  ;;  %v1492_v59 = vadd.f32 %v2856_v14, %v1414_v47  ;;  %v1297_v34 = vpop.f32.mrb[15].mxu0 }
 0x30c   : > { %1510 = vst.msk [vmem:[%s2865_s25 + $0x18] sm:$0xff] %vm1506_vm0, %v1493_v22  ;;  %v1298_v0 = vadd.f32 %v2827_v33, %v1297_v34 }
 0x30d   : > { %1509 = vst.msk [vmem:[%s2865_s25 + $0x10] sm:$0xff] %vm1506_vm0, %v1492_v59 }
 0x30e   : > { %1996 = vtanh.f32 %v1298_v0 }
 0x30f   : > { %1998 = vtanh.f32 %v1303_v40 }
 0x318   : > { %v1997_v54 = vpop.eup %1996 }
 0x319   : > { %v1999_v3 = vpop.eup %1998  ;;  %1766 = vmatprep.mubr.f32.mxu1 %v1997_v54 }
 0x31a   : > { %1767 = vmatmul.mubr.f32.gmra.mrb[14].mxu1 %v1999_v3 }
 0x33b   : > { %v1753_v15 = vpop.f32.mrb[4].mxu1 }
 0x33c   : > { %v1495_v16 = vadd.f32 %v1753_v15, %v2856_v14  ;;  %v1424_v52 = vpop.f32.mrb[5].mxu1 }
 0x33d   : > { %v1494_v44 = vadd.f32 %v2856_v14, %v1424_v52 }
 0x33e   : > { %1512 = vst.msk [vmem:[%s2865_s25 + $0x28] sm:$0xff] %vm1506_vm0, %v1495_v16 }
 0x33f   : > { %1511 = vst.msk [vmem:[%s2865_s25 + $0x20] sm:$0xff] %vm1506_vm0, %v1494_v44 }
 0x35f   : > { %v1756_v33 = vpop.f32.mrb[6].mxu1 }
 0x360   : > { %v1497_v62 = vadd.f32 %v1756_v33, %v2856_v14  ;;  %v1434_v60 = vpop.f32.mrb[7].mxu1 }
 0x361   : > { %v1496_v63 = vadd.f32 %v2856_v14, %v1434_v60 }
 0x362   : > { %1514 = vst.msk [vmem:[%s2865_s25 + $0x38] sm:$0xff] %vm1506_vm0, %v1497_v62 }
 0x363   : > { %1513 = vst.msk [vmem:[%s2865_s25 + $0x30] sm:$0xff] %vm1506_vm0, %v1496_v63 }
 0x3a4   : > { %v1759_v27 = vpop.f32.mrb[8].mxu1 }
 0x3a5   : > { %v1499_v19 = vadd.f32 %v1759_v27, %v2856_v14  ;;  %v1444_v10 = vpop.f32.mrb[9].mxu1 }
 0x3a6   : > { %v1498_v38 = vadd.f32 %v2856_v14, %v1444_v10 }
 0x3a7   : > { %1516 = vst.msk [vmem:[%s2865_s25 + $0x48] sm:$0xff] %vm1506_vm0, %v1499_v19 }
 0x3a8   : > { %1515 = vst.msk [vmem:[%s2865_s25 + $0x40] sm:$0xff] %vm1506_vm0, %v1498_v38 }
 0x3b1   : > { %v1762_v11 = vpop.f32.mrb[10].mxu1 }
 0x3b2   : > { %v1501_v51 = vadd.f32 %v1762_v11, %v2856_v14  ;;  %v1454_v48 = vpop.f32.mrb[11].mxu1 }
 0x3b3   : > { %v1500_v2 = vadd.f32 %v2856_v14, %v1454_v48 }
 0x3b4   : > { %1518 = vst.msk [vmem:[%s2865_s25 + $0x58] sm:$0xff] %vm1506_vm0, %v1501_v51 }
 0x3b5   : > { %1517 = vst.msk [vmem:[%s2865_s25 + $0x50] sm:$0xff] %vm1506_vm0, %v1500_v2 }
 0x3db   : > { %v1765_v1 = vpop.f32.mrb[12].mxu1 }
 0x3dc   : > { %v1503_v12 = vadd.f32 %v1765_v1, %v2856_v14  ;;  %v1464_v53 = vpop.f32.mrb[13].mxu1 }
 0x3dd   : > { %v1502_v43 = vadd.f32 %v2856_v14, %v1464_v53 }
 0x3de   : > { %1520 = vst.msk [vmem:[%s2865_s25 + $0x68] sm:$0xff] %vm1506_vm0, %v1503_v12 }
 0x3df   : > { %1519 = vst.msk [vmem:[%s2865_s25 + $0x60] sm:$0xff] %vm1506_vm0, %v1502_v43 }
 0x3ed   : > { %v1768_v8 = vpop.f32.mrb[14].mxu1 }
 0x3ee   : > { %v1505_v42 = vadd.f32 %v1768_v8, %v2856_v14  ;;  %v1474_v57 = vpop.f32.mrb[15].mxu1 }
 0x3ef   : > { %v1504_v45 = vadd.f32 %v2856_v14, %v1474_v57 }
 0x3f0   : > { %1522 = vst.msk [vmem:[%s2865_s25 + $0x78] sm:$0xff] %vm1506_vm0, %v1505_v42 }
 0x3f1   : > { %1521 = vst.msk [vmem:[%s2865_s25 + $0x70] sm:$0xff] %vm1506_vm0, %v1504_v45 }
 0x3f2 PF: > { %s17_s24 = sadd.s32 1, %s2009_s24  }
 0x3f3   : > { %p14_p4 = scmp.ge.s32.totalorder %s17_s24, 6  }
 0x3f5   :  { %16 = sbr.rel (!%p14_p4) target bundleno = 1 (0x1), region = 78 }

</bundles_post_ra>
